<compile_context>
chip_gen: v7x
topology: tpu7x:2x2x1
jax: 0.10.0
libtpu: 0.0.40
codegen_flags: <defaults>
</compile_context>

<pallas_src>
import jax
import jax.numpy as jnp
import numpy as np
from jax.experimental import pallas as pl
from jax.experimental.pallas import tpu as pltpu

IN_EPS = 1e-3   # InstanceNorm2d eps used by the torch module
BN_EPS = 1e-5   # BatchNorm2d default eps

# Packed per-channel (length-C) column vectors, stored as (C, N_CVEC).
(CV_SP, CV_TP,          # diff_pool   folded BN scale / shift
 CV_S1, CV_T1, CV_B1,   # OAFilter conv1 folded BN + conv bias
 CV_S3, CV_T3, CV_B3,   # OAFilter conv3 folded BN + conv bias
 CV_SU, CV_TU) = range(10)   # diff_unpool folded BN scale / shift
N_CVEC = 10

# Packed per-cluster (length-m) column vectors, stored as (m, N_MCOL).
MC_BP, MC_BU = range(2)      # pool / unpool conv biases
N_MCOL = 2

# Packed per-cluster (length-m) row vectors, stored as (N_MROW, m).
MR_S2, MR_T2, MR_B2 = range(3)   # OAFilter conv2 folded BN + conv bias
N_MROW = 3


# ---------------------------------------------------------------------------
# The fused Mlayer kernel (one batch element per grid step).
# ---------------------------------------------------------------------------
def _mlayer_kernel(x_ref, cvec_ref, mcol_ref, mrow_ref,
                   wp_ref, w1_ref, w2_ref, w3_ref, wu_ref, o_ref):
    f32 = jnp.float32
    bf16 = jnp.bfloat16

    x = x_ref[...]                       # (C, N)  float32, points on lanes
    cv = cvec_ref[...]                   # (C, N_CVEC)
    mc = mcol_ref[...]                   # (m, N_MCOL)
    mr = mrow_ref[...]                   # (N_MROW, m)

    def ccol(i):                         # (C, 1)
        return cv[:, i:i + 1]

    def mcolv(i):                        # (m, 1)
        return mc[:, i:i + 1]

    def mrow(i):                         # (1, m)
        return mr[i:i + 1, :]

    def mxu(a, b):                       # (M,K) @ (K,N), bf16 in / f32 acc
        return jnp.dot(a.astype(bf16), b.astype(bf16),
                       preferred_element_type=f32)

    def mxu_nt(a, b):                    # contract last dim of both: (M,K)x(N,K)->(M,N)
        return jax.lax.dot_general(a.astype(bf16), b.astype(bf16),
                                   (((1,), (1,)), ((), ())),
                                   preferred_element_type=f32)

    def inorm_stats(v):                  # InstanceNorm stats over the lane axis
        mu = jnp.mean(v, axis=1, keepdims=True)
        var = jnp.mean(jnp.square(v - mu), axis=1, keepdims=True)
        return mu, jax.lax.rsqrt(var + IN_EPS)

    def in_bn_relu(v, mu, rstd, s, t):
        # relu(BN_folded(InstanceNorm(v))) fused into one multiply-add + max.
        scale = s * rstd
        shift = t - mu * scale
        return jnp.maximum(v * scale + shift, 0.0)

    def softmax_lanes(e):                # softmax over axis=1 (lanes)
        e = jnp.exp(e - jnp.max(e, axis=1, keepdims=True))
        return e * pl.reciprocal(jnp.sum(e, axis=1, keepdims=True), approx=True)

    def softmax_sublanes(e):             # softmax over axis=0 (sublanes)
        e = jnp.exp(e - jnp.max(e, axis=0, keepdims=True))
        return e * pl.reciprocal(jnp.sum(e, axis=0, keepdims=True), approx=True)

    # Shared InstanceNorm statistics of the input (pool and unpool both
    # instance-normalize the same x1_1; affine=False so stats are identical).
    mu_x, rstd_x = inorm_stats(x)

    # ------------------------------ diff_pool ------------------------------
    hp = in_bn_relu(x, mu_x, rstd_x, ccol(CV_SP), ccol(CV_TP))        # (C, N)
    embed_p = mxu(wp_ref[...], hp) + mcolv(MC_BP)                     # (m, N)
    s_p = softmax_lanes(embed_p)                                      # softmax over N
    # x_down[c, j] = sum_n x[c, n] * S[j, n]
    d = mxu_nt(x, s_p)                                                # (C, m)

    # ------------------------------ OAFilter -------------------------------
    # conv1: IN -> BN -> ReLU -> 1x1 conv (C->C); the trailing trans(1,2) is a
    # pure relabeling in this layout (rows = out channel, cols = cluster).
    mu1, rstd1 = inorm_stats(d)
    h1 = in_bn_relu(d, mu1, rstd1, ccol(CV_S1), ccol(CV_T1))
    y1 = mxu(w1_ref[...], h1) + ccol(CV_B1)                           # (C, m)

    # conv2: BN over the cluster dim -> ReLU -> 1x1 conv mixing clusters.
    g = jnp.maximum(y1 * mrow(MR_S2) + mrow(MR_T2), 0.0)              # (C, m)
    y2 = mxu_nt(g, w2_ref[...]) + mrow(MR_B2)                         # (C, m)
    z = y1 + y2                                                       # residual

    # conv3: trans back (relabeling) -> IN -> BN -> ReLU -> 1x1 conv.
    mu3, rstd3 = inorm_stats(z)
    h3 = in_bn_relu(z, mu3, rstd3, ccol(CV_S3), ccol(CV_T3))
    y3 = mxu(w3_ref[...], h3) + ccol(CV_B3)
    x2 = y3 + d                                                       # shortcut (no shot_cut conv)

    # ----------------------------- diff_unpool -----------------------------
    hu = in_bn_relu(x, mu_x, rstd_x, ccol(CV_SU), ccol(CV_TU))        # (C, N)
    embed_u = mxu(wu_ref[...], hu) + mcolv(MC_BU)                     # (m, N)
    s_u = softmax_sublanes(embed_u)                                   # softmax over clusters
    o_ref[...] = mxu(x2, s_u).astype(o_ref.dtype)                     # (C, N) lane-dense store


def mlayer_forward(features, params):
    """features: (B, C, N, 1) float32 -> (B, C, N, 1), matching Mlayer.forward."""
    B, C, N, _ = features.shape
    m = params["Wp"].shape[0]
    x3 = features.reshape(B, C, N)
    out = pl.pallas_call(
        _mlayer_kernel,
        out_shape=jax.ShapeDtypeStruct((B, C, N), jnp.float32),
        grid=(B,),
        in_specs=[
            pl.BlockSpec((None, C, N), lambda b: (b, 0, 0)),     # x, one batch / step
            pl.BlockSpec((C, N_CVEC), lambda b: (0, 0)),         # packed per-C vectors
            pl.BlockSpec((m, N_MCOL), lambda b: (0, 0)),         # packed per-m columns
            pl.BlockSpec((N_MROW, m), lambda b: (0, 0)),         # packed per-m rows
            pl.BlockSpec((m, C), lambda b: (0, 0)),              # Wp  (pool conv)
            pl.BlockSpec((C, C), lambda b: (0, 0)),              # W1  (OAFilter conv1)
            pl.BlockSpec((m, m), lambda b: (0, 0)),              # W2  (OAFilter conv2)
            pl.BlockSpec((C, C), lambda b: (0, 0)),              # W3  (OAFilter conv3)
            pl.BlockSpec((m, C), lambda b: (0, 0)),              # Wu  (unpool conv)
        ],
        out_specs=pl.BlockSpec((None, C, N), lambda b: (b, 0, 0)),
        compiler_params=pltpu.CompilerParams(
            dimension_semantics=("parallel",)),
    )(x3, params["cvecs"], params["mcols"], params["mrows"],
      params["Wp"], params["W1"], params["W2"], params["W3"], params["Wu"])
    return out[..., None]


# ---------------------------------------------------------------------------
# Deterministic parameter construction (BatchNorm in eval mode, then folded).
# ---------------------------------------------------------------------------
def _bn_raw(n, phase):
    i = jnp.arange(n, dtype=jnp.float32)
    return dict(gamma=1.0 + 0.1 * jnp.cos(0.37 * i + phase),
                beta=0.05 * jnp.sin(0.21 * i + phase),
                mean=0.1 * jnp.sin(0.13 * i + 2.0 * phase),
                var=1.0 + 0.2 * jnp.abs(jnp.cos(0.29 * i + phase)))


def _fold_bn(p):
    s = p["gamma"] / jnp.sqrt(p["var"] + BN_EPS)
    return s, p["beta"] - p["mean"] * s


def init_params(key, C, m):
    ks = jax.random.split(key, 10)

    def wn(k, shape, scale):
        return scale * jax.random.normal(k, shape, jnp.float32)

    raw = {
        "pool":   dict(bn=_bn_raw(C, 0.1), W=wn(ks[0], (m, C), 0.6), b=wn(ks[1], (m,), 0.1)),
        "conv1":  dict(bn=_bn_raw(C, 0.4), W=wn(ks[2], (C, C), 0.3), b=wn(ks[3], (C,), 0.1)),
        "conv2":  dict(bn=_bn_raw(m, 0.7), W=wn(ks[4], (m, m), 0.3), b=wn(ks[5], (m,), 0.1)),
        "conv3":  dict(bn=_bn_raw(C, 1.0), W=wn(ks[6], (C, C), 0.3), b=wn(ks[7], (C,), 0.1)),
        "unpool": dict(bn=_bn_raw(C, 1.3), W=wn(ks[8], (m, C), 0.6), b=wn(ks[9], (m,), 0.1)),
    }

    s_p, t_p = _fold_bn(raw["pool"]["bn"])
    s1, t1 = _fold_bn(raw["conv1"]["bn"])
    s2, t2 = _fold_bn(raw["conv2"]["bn"])
    s3, t3 = _fold_bn(raw["conv3"]["bn"])
    s_u, t_u = _fold_bn(raw["unpool"]["bn"])

    cvec_cols = [None] * N_CVEC
    cvec_cols[CV_SP], cvec_cols[CV_TP] = s_p, t_p
    cvec_cols[CV_S1], cvec_cols[CV_T1] = s1, t1
    cvec_cols[CV_B1] = raw["conv1"]["b"]
    cvec_cols[CV_S3], cvec_cols[CV_T3] = s3, t3
    cvec_cols[CV_B3] = raw["conv3"]["b"]
    cvec_cols[CV_SU], cvec_cols[CV_TU] = s_u, t_u
    cvecs = jnp.stack(cvec_cols, axis=1)                     # (C, N_CVEC)

    mcol_cols = [None] * N_MCOL
    mcol_cols[MC_BP] = raw["pool"]["b"]
    mcol_cols[MC_BU] = raw["unpool"]["b"]
    mcols = jnp.stack(mcol_cols, axis=1)                     # (m, N_MCOL)

    mrow_rows = [None] * N_MROW
    mrow_rows[MR_S2], mrow_rows[MR_T2] = s2, t2
    mrow_rows[MR_B2] = raw["conv2"]["b"]
    mrows = jnp.stack(mrow_rows, axis=0)                     # (N_MROW, m)

    packed = dict(
        cvecs=cvecs, mcols=mcols, mrows=mrows,
        # MXU weights stored as bf16 (halves weight DMA; f32 accumulation).
        Wp=raw["pool"]["W"].astype(jnp.bfloat16),
        W1=raw["conv1"]["W"].astype(jnp.bfloat16),
        W2=raw["conv2"]["W"].astype(jnp.bfloat16),
        W3=raw["conv3"]["W"].astype(jnp.bfloat16),
        Wu=raw["unpool"]["W"].astype(jnp.bfloat16),
    )
    return raw, packed


# ---------------------------------------------------------------------------
# Pure-JAX reference, written in the torch (NCHW) layout, with the same
# bf16-operand / f32-accumulate matmul convention as the kernel.
# ---------------------------------------------------------------------------
def _mxu_einsum(eq, a, b):
    return jnp.einsum(eq, a.astype(jnp.bfloat16), b.astype(jnp.bfloat16),
                      preferred_element_type=jnp.float32)


def _ref_inorm(v):
    mu = jnp.mean(v, axis=(2, 3), keepdims=True)
    var = jnp.mean(jnp.square(v - mu), axis=(2, 3), keepdims=True)
    return (v - mu) / jnp.sqrt(var + IN_EPS)


def _ref_bn(v, p):
    s = p["gamma"] / jnp.sqrt(p["var"] + BN_EPS)
    t = p["beta"] - p["mean"] * s
    return v * s.reshape(1, -1, 1, 1) + t.reshape(1, -1, 1, 1)


def _ref_conv1x1(v, W, b):
    return _mxu_einsum("oc,bchw->bohw", W, v) + b.reshape(1, -1, 1, 1)


def reference_mlayer(x, raw):
    # diff_pool
    h = jax.nn.relu(_ref_bn(_ref_inorm(x), raw["pool"]["bn"]))
    embed = _ref_conv1x1(h, raw["pool"]["W"], raw["pool"]["b"])        # (B, m, N, 1)
    S = jax.nn.softmax(embed, axis=2)[..., 0]                          # (B, m, N)
    x_down = _mxu_einsum("bcn,bmn->bcm", x[..., 0], S)[..., None]      # (B, C, m, 1)

    # OAFilter (out_channels == channels -> no shot_cut conv)
    d = x_down
    h1 = jax.nn.relu(_ref_bn(_ref_inorm(d), raw["conv1"]["bn"]))
    y1 = _ref_conv1x1(h1, raw["conv1"]["W"], raw["conv1"]["b"])        # (B, C, m, 1)
    out1 = jnp.transpose(y1, (0, 2, 1, 3))                             # trans(1,2) -> (B, m, C, 1)
    h2 = jax.nn.relu(_ref_bn(out1, raw["conv2"]["bn"]))
    y2 = _ref_conv1x1(h2, raw["conv2"]["W"], raw["conv2"]["b"])        # (B, m, C, 1)
    out = out1 + y2
    z = jnp.transpose(out, (0, 2, 1, 3))                               # (B, C, m, 1)
    h3 = jax.nn.relu(_ref_bn(_ref_inorm(z), raw["conv3"]["bn"]))
    y3 = _ref_conv1x1(h3, raw["conv3"]["W"], raw["conv3"]["b"])
    x2 = y3 + d                                                        # (B, C, m, 1)

    # diff_unpool
    hu = jax.nn.relu(_ref_bn(_ref_inorm(x), raw["unpool"]["bn"]))
    embed_u = _ref_conv1x1(hu, raw["unpool"]["W"], raw["unpool"]["b"])
    S_u = jax.nn.softmax(embed_u, axis=1)[..., 0]                      # (B, m, N)
    return _mxu_einsum("bcm,bmn->bcn", x2[..., 0], S_u)[..., None]     # (B, C, N, 1)


if __name__ == "__main__":
    # Mlayer(net_channels=32, depth=1, clusters=32) on (B=2, C=32, N=128, 1).
    # (`depth` only stores layer_num; the forward always applies one OAFilter.)
    B, C, N, M = 2, 32, 128, 32
    key = jax.random.PRNGKey(0)
    k_x, k_p = jax.random.split(key)
    x1_1 = jax.random.normal(k_x, (B, C, N, 1), jnp.float32)
    raw_params, packed_params = init_params(k_p, C, M)

    out = jax.block_until_ready(mlayer_forward(x1_1, packed_params))
    assert out.shape == (B, C, N, 1), out.shape

    ref = jax.block_until_ready(reference_mlayer(x1_1, raw_params))
    np.testing.assert_allclose(np.asarray(out), np.asarray(ref),
                               rtol=2e-2, atol=2e-2)

    print("KERNEL_OK")
</pallas_src>

<mosaic_0001>
module attributes {stable_mosaic.version = 11 : i64} {
  func.func @_mlayer_kernel(%arg0: i32, %arg1: memref<1x32x128xf32, #tpu.memory_space<vmem>>, %arg2: memref<32x10xf32, #tpu.memory_space<vmem>>, %arg3: memref<32x2xf32, #tpu.memory_space<vmem>>, %arg4: memref<3x32xf32, #tpu.memory_space<vmem>>, %arg5: memref<32x32xbf16, #tpu.memory_space<vmem>>, %arg6: memref<32x32xbf16, #tpu.memory_space<vmem>>, %arg7: memref<32x32xbf16, #tpu.memory_space<vmem>>, %arg8: memref<32x32xbf16, #tpu.memory_space<vmem>>, %arg9: memref<32x32xbf16, #tpu.memory_space<vmem>>, %arg10: memref<1x32x128xf32, #tpu.memory_space<vmem>>) attributes {dimension_semantics = [#tpu.dimension_semantics<parallel>], iteration_bounds = array<i64: 2>, scalar_prefetch = 0 : i64, scratch_operands = 0 : i64, tpu.core_type = #tpu.core_type<tc>, window_params = [{transform_indices = @transform_0, window_bounds = array<i64: 1, 32, 128>}, {pipeline_mode = #tpu.pipeline_mode<synchronous>, transform_indices = @transform_1, window_bounds = array<i64: 32, 10>}, {pipeline_mode = #tpu.pipeline_mode<synchronous>, transform_indices = @transform_2, window_bounds = array<i64: 32, 2>}, {pipeline_mode = #tpu.pipeline_mode<synchronous>, transform_indices = @transform_3, window_bounds = array<i64: 3, 32>}, {pipeline_mode = #tpu.pipeline_mode<synchronous>, transform_indices = @transform_4, window_bounds = array<i64: 32, 32>}, {pipeline_mode = #tpu.pipeline_mode<synchronous>, transform_indices = @transform_5, window_bounds = array<i64: 32, 32>}, {pipeline_mode = #tpu.pipeline_mode<synchronous>, transform_indices = @transform_6, window_bounds = array<i64: 32, 32>}, {pipeline_mode = #tpu.pipeline_mode<synchronous>, transform_indices = @transform_7, window_bounds = array<i64: 32, 32>}, {pipeline_mode = #tpu.pipeline_mode<synchronous>, transform_indices = @transform_8, window_bounds = array<i64: 32, 32>}, {transform_indices = @transform_9, window_bounds = array<i64: 1, 32, 128>}]} {
    %c0 = arith.constant 0 : index
    %c0_0 = arith.constant 0 : index
    %c0_1 = arith.constant 0 : index
    %0 = vector.load %arg1[%c0, %c0_0, %c0_1] : memref<1x32x128xf32, #tpu.memory_space<vmem>>, vector<1x32x128xf32>
    %1 = vector.shape_cast %0 : vector<1x32x128xf32> to vector<32x128xf32>
    %c0_2 = arith.constant 0 : index
    %c0_3 = arith.constant 0 : index
    %2 = vector.load %arg2[%c0_2, %c0_3] : memref<32x10xf32, #tpu.memory_space<vmem>>, vector<32x10xf32>
    %c0_4 = arith.constant 0 : index
    %c0_5 = arith.constant 0 : index
    %3 = vector.load %arg3[%c0_4, %c0_5] : memref<32x2xf32, #tpu.memory_space<vmem>>, vector<32x2xf32>
    %c0_6 = arith.constant 0 : index
    %c0_7 = arith.constant 0 : index
    %4 = vector.load %arg4[%c0_6, %c0_7] : memref<3x32xf32, #tpu.memory_space<vmem>>, vector<3x32xf32>
    %cst = arith.constant dense<0.000000e+00> : vector<32xf32>
    %5 = vector.multi_reduction <add>, %1, %cst [1] : vector<32x128xf32> to vector<32xf32>
    %6 = vector.shape_cast %5 : vector<32xf32> to vector<32x1xf32>
    %cst_8 = arith.constant 1.280000e+02 : f32
    %7 = vector.broadcast %cst_8 : f32 to vector<32x1xf32>
    %8 = arith.divf %6, %7 : vector<32x1xf32>
    %9 = vector.broadcast %8 : vector<32x1xf32> to vector<32x128xf32>
    %10 = arith.subf %1, %9 : vector<32x128xf32>
    %11 = arith.mulf %10, %10 : vector<32x128xf32>
    %cst_9 = arith.constant dense<0.000000e+00> : vector<32xf32>
    %12 = vector.multi_reduction <add>, %11, %cst_9 [1] : vector<32x128xf32> to vector<32xf32>
    %13 = vector.shape_cast %12 : vector<32xf32> to vector<32x1xf32>
    %cst_10 = arith.constant 1.280000e+02 : f32
    %14 = vector.broadcast %cst_10 : f32 to vector<32x1xf32>
    %15 = arith.divf %13, %14 : vector<32x1xf32>
    %cst_11 = arith.constant 1.000000e-03 : f32
    %16 = vector.broadcast %cst_11 : f32 to vector<32x1xf32>
    %17 = arith.addf %15, %16 : vector<32x1xf32>
    %18 = math.rsqrt %17 : vector<32x1xf32>
    %19 = vector.extract_strided_slice %2 {offsets = [0, 0], sizes = [32, 1], strides = [1, 1]} : vector<32x10xf32> to vector<32x1xf32>
    %20 = vector.extract_strided_slice %2 {offsets = [0, 1], sizes = [32, 1], strides = [1, 1]} : vector<32x10xf32> to vector<32x1xf32>
    %21 = arith.mulf %19, %18 : vector<32x1xf32>
    %22 = arith.mulf %8, %21 : vector<32x1xf32>
    %23 = arith.subf %20, %22 : vector<32x1xf32>
    %24 = vector.broadcast %21 : vector<32x1xf32> to vector<32x128xf32>
    %25 = arith.mulf %1, %24 : vector<32x128xf32>
    %26 = vector.broadcast %23 : vector<32x1xf32> to vector<32x128xf32>
    %27 = arith.addf %25, %26 : vector<32x128xf32>
    %cst_12 = arith.constant 0.000000e+00 : f32
    %28 = vector.broadcast %cst_12 : f32 to vector<32x128xf32>
    %29 = arith.maximumf %27, %28 : vector<32x128xf32>
    %c0_13 = arith.constant 0 : index
    %c0_14 = arith.constant 0 : index
    %30 = vector.load %arg5[%c0_13, %c0_14] : memref<32x32xbf16, #tpu.memory_space<vmem>>, vector<32x32xbf16>
    %31 = arith.truncf %29 : vector<32x128xf32> to vector<32x128xbf16>
    %cst_15 = arith.constant dense<0.000000e+00> : vector<32x128xf32>
    %32 = tpu.matmul %30, %31, %cst_15 {dimension_numbers = #tpu.dot_dimension_numbers<[1], [0], [0], [1], [0, 0, 1, 1], [], []>} : vector<32x32xbf16>, vector<32x128xbf16>, vector<32x128xf32> -> vector<32x128xf32>
    %33 = vector.extract_strided_slice %3 {offsets = [0, 0], sizes = [32, 1], strides = [1, 1]} : vector<32x2xf32> to vector<32x1xf32>
    %34 = vector.broadcast %33 : vector<32x1xf32> to vector<32x128xf32>
    %35 = arith.addf %32, %34 : vector<32x128xf32>
    %cst_16 = arith.constant dense<0xFF800000> : vector<32xf32>
    %36 = vector.multi_reduction <maximumf>, %35, %cst_16 [1] : vector<32x128xf32> to vector<32xf32>
    %37 = vector.shape_cast %36 : vector<32xf32> to vector<32x1xf32>
    %38 = vector.broadcast %37 : vector<32x1xf32> to vector<32x128xf32>
    %39 = arith.subf %35, %38 : vector<32x128xf32>
    %40 = math.exp %39 : vector<32x128xf32>
    %cst_17 = arith.constant dense<0.000000e+00> : vector<32xf32>
    %41 = vector.multi_reduction <add>, %40, %cst_17 [1] : vector<32x128xf32> to vector<32xf32>
    %42 = vector.shape_cast %41 : vector<32xf32> to vector<32x1xf32>
    %43 = tpu.reciprocal %42 {approx = true} : vector<32x1xf32> -> vector<32x1xf32>
    %44 = vector.broadcast %43 : vector<32x1xf32> to vector<32x128xf32>
    %45 = arith.mulf %40, %44 : vector<32x128xf32>
    %46 = arith.truncf %1 : vector<32x128xf32> to vector<32x128xbf16>
    %47 = arith.truncf %45 : vector<32x128xf32> to vector<32x128xbf16>
    %cst_18 = arith.constant dense<0.000000e+00> : vector<32x32xf32>
    %48 = tpu.matmul %46, %47, %cst_18 {dimension_numbers = #tpu.dot_dimension_numbers<[1], [1], [0], [0], [0, 0, 1, 0], [], []>} : vector<32x128xbf16>, vector<32x128xbf16>, vector<32x32xf32> -> vector<32x32xf32>
    %cst_19 = arith.constant dense<0.000000e+00> : vector<32xf32>
    %49 = vector.multi_reduction <add>, %48, %cst_19 [1] : vector<32x32xf32> to vector<32xf32>
    %50 = vector.shape_cast %49 : vector<32xf32> to vector<32x1xf32>
    %cst_20 = arith.constant 3.200000e+01 : f32
    %51 = vector.broadcast %cst_20 : f32 to vector<32x1xf32>
    %52 = arith.divf %50, %51 : vector<32x1xf32>
    %53 = vector.broadcast %52 : vector<32x1xf32> to vector<32x32xf32>
    %54 = arith.subf %48, %53 : vector<32x32xf32>
    %55 = arith.mulf %54, %54 : vector<32x32xf32>
    %cst_21 = arith.constant dense<0.000000e+00> : vector<32xf32>
    %56 = vector.multi_reduction <add>, %55, %cst_21 [1] : vector<32x32xf32> to vector<32xf32>
    %57 = vector.shape_cast %56 : vector<32xf32> to vector<32x1xf32>
    %cst_22 = arith.constant 3.200000e+01 : f32
    %58 = vector.broadcast %cst_22 : f32 to vector<32x1xf32>
    %59 = arith.divf %57, %58 : vector<32x1xf32>
    %cst_23 = arith.constant 1.000000e-03 : f32
    %60 = vector.broadcast %cst_23 : f32 to vector<32x1xf32>
    %61 = arith.addf %59, %60 : vector<32x1xf32>
    %62 = math.rsqrt %61 : vector<32x1xf32>
    %63 = vector.extract_strided_slice %2 {offsets = [0, 2], sizes = [32, 1], strides = [1, 1]} : vector<32x10xf32> to vector<32x1xf32>
    %64 = vector.extract_strided_slice %2 {offsets = [0, 3], sizes = [32, 1], strides = [1, 1]} : vector<32x10xf32> to vector<32x1xf32>
    %65 = arith.mulf %63, %62 : vector<32x1xf32>
    %66 = arith.mulf %52, %65 : vector<32x1xf32>
    %67 = arith.subf %64, %66 : vector<32x1xf32>
    %68 = vector.broadcast %65 : vector<32x1xf32> to vector<32x32xf32>
    %69 = arith.mulf %48, %68 : vector<32x32xf32>
    %70 = vector.broadcast %67 : vector<32x1xf32> to vector<32x32xf32>
    %71 = arith.addf %69, %70 : vector<32x32xf32>
    %cst_24 = arith.constant 0.000000e+00 : f32
    %72 = vector.broadcast %cst_24 : f32 to vector<32x32xf32>
    %73 = arith.maximumf %71, %72 : vector<32x32xf32>
    %c0_25 = arith.constant 0 : index
    %c0_26 = arith.constant 0 : index
    %74 = vector.load %arg6[%c0_25, %c0_26] : memref<32x32xbf16, #tpu.memory_space<vmem>>, vector<32x32xbf16>
    %75 = arith.truncf %73 : vector<32x32xf32> to vector<32x32xbf16>
    %cst_27 = arith.constant dense<0.000000e+00> : vector<32x32xf32>
    %76 = tpu.matmul %74, %75, %cst_27 {dimension_numbers = #tpu.dot_dimension_numbers<[1], [0], [0], [1], [0, 0, 1, 1], [], []>} : vector<32x32xbf16>, vector<32x32xbf16>, vector<32x32xf32> -> vector<32x32xf32>
    %77 = vector.extract_strided_slice %2 {offsets = [0, 4], sizes = [32, 1], strides = [1, 1]} : vector<32x10xf32> to vector<32x1xf32>
    %78 = vector.broadcast %77 : vector<32x1xf32> to vector<32x32xf32>
    %79 = arith.addf %76, %78 : vector<32x32xf32>
    %80 = vector.extract_strided_slice %4 {offsets = [0, 0], sizes = [1, 32], strides = [1, 1]} : vector<3x32xf32> to vector<1x32xf32>
    %81 = vector.broadcast %80 : vector<1x32xf32> to vector<32x32xf32>
    %82 = arith.mulf %79, %81 : vector<32x32xf32>
    %83 = vector.extract_strided_slice %4 {offsets = [1, 0], sizes = [1, 32], strides = [1, 1]} : vector<3x32xf32> to vector<1x32xf32>
    %84 = vector.broadcast %83 : vector<1x32xf32> to vector<32x32xf32>
    %85 = arith.addf %82, %84 : vector<32x32xf32>
    %cst_28 = arith.constant 0.000000e+00 : f32
    %86 = vector.broadcast %cst_28 : f32 to vector<32x32xf32>
    %87 = arith.maximumf %85, %86 : vector<32x32xf32>
    %c0_29 = arith.constant 0 : index
    %c0_30 = arith.constant 0 : index
    %88 = vector.load %arg7[%c0_29, %c0_30] : memref<32x32xbf16, #tpu.memory_space<vmem>>, vector<32x32xbf16>
    %89 = arith.truncf %87 : vector<32x32xf32> to vector<32x32xbf16>
    %cst_31 = arith.constant dense<0.000000e+00> : vector<32x32xf32>
    %90 = tpu.matmul %89, %88, %cst_31 {dimension_numbers = #tpu.dot_dimension_numbers<[1], [1], [0], [0], [0, 0, 1, 0], [], []>} : vector<32x32xbf16>, vector<32x32xbf16>, vector<32x32xf32> -> vector<32x32xf32>
    %91 = vector.extract_strided_slice %4 {offsets = [2, 0], sizes = [1, 32], strides = [1, 1]} : vector<3x32xf32> to vector<1x32xf32>
    %92 = vector.broadcast %91 : vector<1x32xf32> to vector<32x32xf32>
    %93 = arith.addf %90, %92 : vector<32x32xf32>
    %94 = arith.addf %79, %93 : vector<32x32xf32>
    %cst_32 = arith.constant dense<0.000000e+00> : vector<32xf32>
    %95 = vector.multi_reduction <add>, %94, %cst_32 [1] : vector<32x32xf32> to vector<32xf32>
    %96 = vector.shape_cast %95 : vector<32xf32> to vector<32x1xf32>
    %cst_33 = arith.constant 3.200000e+01 : f32
    %97 = vector.broadcast %cst_33 : f32 to vector<32x1xf32>
    %98 = arith.divf %96, %97 : vector<32x1xf32>
    %99 = vector.broadcast %98 : vector<32x1xf32> to vector<32x32xf32>
    %100 = arith.subf %94, %99 : vector<32x32xf32>
    %101 = arith.mulf %100, %100 : vector<32x32xf32>
    %cst_34 = arith.constant dense<0.000000e+00> : vector<32xf32>
    %102 = vector.multi_reduction <add>, %101, %cst_34 [1] : vector<32x32xf32> to vector<32xf32>
    %103 = vector.shape_cast %102 : vector<32xf32> to vector<32x1xf32>
    %cst_35 = arith.constant 3.200000e+01 : f32
    %104 = vector.broadcast %cst_35 : f32 to vector<32x1xf32>
    %105 = arith.divf %103, %104 : vector<32x1xf32>
    %cst_36 = arith.constant 1.000000e-03 : f32
    %106 = vector.broadcast %cst_36 : f32 to vector<32x1xf32>
    %107 = arith.addf %105, %106 : vector<32x1xf32>
    %108 = math.rsqrt %107 : vector<32x1xf32>
    %109 = vector.extract_strided_slice %2 {offsets = [0, 5], sizes = [32, 1], strides = [1, 1]} : vector<32x10xf32> to vector<32x1xf32>
    %110 = vector.extract_strided_slice %2 {offsets = [0, 6], sizes = [32, 1], strides = [1, 1]} : vector<32x10xf32> to vector<32x1xf32>
    %111 = arith.mulf %109, %108 : vector<32x1xf32>
    %112 = arith.mulf %98, %111 : vector<32x1xf32>
    %113 = arith.subf %110, %112 : vector<32x1xf32>
    %114 = vector.broadcast %111 : vector<32x1xf32> to vector<32x32xf32>
    %115 = arith.mulf %94, %114 : vector<32x32xf32>
    %116 = vector.broadcast %113 : vector<32x1xf32> to vector<32x32xf32>
    %117 = arith.addf %115, %116 : vector<32x32xf32>
    %cst_37 = arith.constant 0.000000e+00 : f32
    %118 = vector.broadcast %cst_37 : f32 to vector<32x32xf32>
    %119 = arith.maximumf %117, %118 : vector<32x32xf32>
    %c0_38 = arith.constant 0 : index
    %c0_39 = arith.constant 0 : index
    %120 = vector.load %arg8[%c0_38, %c0_39] : memref<32x32xbf16, #tpu.memory_space<vmem>>, vector<32x32xbf16>
    %121 = arith.truncf %119 : vector<32x32xf32> to vector<32x32xbf16>
    %cst_40 = arith.constant dense<0.000000e+00> : vector<32x32xf32>
    %122 = tpu.matmul %120, %121, %cst_40 {dimension_numbers = #tpu.dot_dimension_numbers<[1], [0], [0], [1], [0, 0, 1, 1], [], []>} : vector<32x32xbf16>, vector<32x32xbf16>, vector<32x32xf32> -> vector<32x32xf32>
    %123 = vector.extract_strided_slice %2 {offsets = [0, 7], sizes = [32, 1], strides = [1, 1]} : vector<32x10xf32> to vector<32x1xf32>
    %124 = vector.broadcast %123 : vector<32x1xf32> to vector<32x32xf32>
    %125 = arith.addf %122, %124 : vector<32x32xf32>
    %126 = arith.addf %125, %48 : vector<32x32xf32>
    %127 = vector.extract_strided_slice %2 {offsets = [0, 8], sizes = [32, 1], strides = [1, 1]} : vector<32x10xf32> to vector<32x1xf32>
    %128 = vector.extract_strided_slice %2 {offsets = [0, 9], sizes = [32, 1], strides = [1, 1]} : vector<32x10xf32> to vector<32x1xf32>
    %129 = arith.mulf %127, %18 : vector<32x1xf32>
    %130 = arith.mulf %8, %129 : vector<32x1xf32>
    %131 = arith.subf %128, %130 : vector<32x1xf32>
    %132 = vector.broadcast %129 : vector<32x1xf32> to vector<32x128xf32>
    %133 = arith.mulf %1, %132 : vector<32x128xf32>
    %134 = vector.broadcast %131 : vector<32x1xf32> to vector<32x128xf32>
    %135 = arith.addf %133, %134 : vector<32x128xf32>
    %cst_41 = arith.constant 0.000000e+00 : f32
    %136 = vector.broadcast %cst_41 : f32 to vector<32x128xf32>
    %137 = arith.maximumf %135, %136 : vector<32x128xf32>
    %c0_42 = arith.constant 0 : index
    %c0_43 = arith.constant 0 : index
    %138 = vector.load %arg9[%c0_42, %c0_43] : memref<32x32xbf16, #tpu.memory_space<vmem>>, vector<32x32xbf16>
    %139 = arith.truncf %137 : vector<32x128xf32> to vector<32x128xbf16>
    %cst_44 = arith.constant dense<0.000000e+00> : vector<32x128xf32>
    %140 = tpu.matmul %138, %139, %cst_44 {dimension_numbers = #tpu.dot_dimension_numbers<[1], [0], [0], [1], [0, 0, 1, 1], [], []>} : vector<32x32xbf16>, vector<32x128xbf16>, vector<32x128xf32> -> vector<32x128xf32>
    %141 = vector.extract_strided_slice %3 {offsets = [0, 1], sizes = [32, 1], strides = [1, 1]} : vector<32x2xf32> to vector<32x1xf32>
    %142 = vector.broadcast %141 : vector<32x1xf32> to vector<32x128xf32>
    %143 = arith.addf %140, %142 : vector<32x128xf32>
    %cst_45 = arith.constant dense<0xFF800000> : vector<128xf32>
    %144 = vector.multi_reduction <maximumf>, %143, %cst_45 [0] : vector<32x128xf32> to vector<128xf32>
    %145 = vector.shape_cast %144 : vector<128xf32> to vector<1x128xf32>
    %146 = vector.broadcast %145 : vector<1x128xf32> to vector<32x128xf32>
    %147 = arith.subf %143, %146 : vector<32x128xf32>
    %148 = math.exp %147 : vector<32x128xf32>
    %cst_46 = arith.constant dense<0.000000e+00> : vector<128xf32>
    %149 = vector.multi_reduction <add>, %148, %cst_46 [0] : vector<32x128xf32> to vector<128xf32>
    %150 = vector.shape_cast %149 : vector<128xf32> to vector<1x128xf32>
    %151 = tpu.reciprocal %150 {approx = true} : vector<1x128xf32> -> vector<1x128xf32>
    %152 = vector.broadcast %151 : vector<1x128xf32> to vector<32x128xf32>
    %153 = arith.mulf %148, %152 : vector<32x128xf32>
    %154 = arith.truncf %126 : vector<32x32xf32> to vector<32x32xbf16>
    %155 = arith.truncf %153 : vector<32x128xf32> to vector<32x128xbf16>
    %cst_47 = arith.constant dense<0.000000e+00> : vector<32x128xf32>
    %156 = tpu.matmul %154, %155, %cst_47 {dimension_numbers = #tpu.dot_dimension_numbers<[1], [0], [0], [1], [0, 0, 1, 1], [], []>} : vector<32x32xbf16>, vector<32x128xbf16>, vector<32x128xf32> -> vector<32x128xf32>
    %c0_48 = arith.constant 0 : index
    %c0_49 = arith.constant 0 : index
    %c0_50 = arith.constant 0 : index
    %157 = vector.load %arg10[%c0_48, %c0_49, %c0_50] : memref<1x32x128xf32, #tpu.memory_space<vmem>>, vector<1x32x128xf32>
    %158 = vector.shape_cast %157 : vector<1x32x128xf32> to vector<32x128xf32>
    %159 = vector.shape_cast %156 : vector<32x128xf32> to vector<1x32x128xf32>
    tpu.vector_store %arg10[%c0_48, %c0_49, %c0_50], %159 {strides = array<i32>} : memref<1x32x128xf32, #tpu.memory_space<vmem>>, vector<1x32x128xf32>,
    return
  }
  func.func @transform_0(%arg0: i32) -> (i32, i32, i32) {
    %c0_i32 = arith.constant 0 : i32
    %c0_i32_0 = arith.constant 0 : i32
    %c0_i32_1 = arith.constant 0 : i32
    return %arg0, %c0_i32, %c0_i32_0 : i32, i32, i32
  }
  func.func @transform_1(%arg0: i32) -> (i32, i32) {
    %c0_i32 = arith.constant 0 : i32
    %c0_i32_0 = arith.constant 0 : i32
    %c0_i32_1 = arith.constant 0 : i32
    return %c0_i32, %c0_i32_0 : i32, i32
  }
  func.func @transform_2(%arg0: i32) -> (i32, i32) {
    %c0_i32 = arith.constant 0 : i32
    %c0_i32_0 = arith.constant 0 : i32
    %c0_i32_1 = arith.constant 0 : i32
    return %c0_i32, %c0_i32_0 : i32, i32
  }
  func.func @transform_3(%arg0: i32) -> (i32, i32) {
    %c0_i32 = arith.constant 0 : i32
    %c0_i32_0 = arith.constant 0 : i32
    %c0_i32_1 = arith.constant 0 : i32
    return %c0_i32, %c0_i32_0 : i32, i32
  }
  func.func @transform_4(%arg0: i32) -> (i32, i32) {
    %c0_i32 = arith.constant 0 : i32
    %c0_i32_0 = arith.constant 0 : i32
    %c0_i32_1 = arith.constant 0 : i32
    return %c0_i32, %c0_i32_0 : i32, i32
  }
  func.func @transform_5(%arg0: i32) -> (i32, i32) {
    %c0_i32 = arith.constant 0 : i32
    %c0_i32_0 = arith.constant 0 : i32
    %c0_i32_1 = arith.constant 0 : i32
    return %c0_i32, %c0_i32_0 : i32, i32
  }
  func.func @transform_6(%arg0: i32) -> (i32, i32) {
    %c0_i32 = arith.constant 0 : i32
    %c0_i32_0 = arith.constant 0 : i32
    %c0_i32_1 = arith.constant 0 : i32
    return %c0_i32, %c0_i32_0 : i32, i32
  }
  func.func @transform_7(%arg0: i32) -> (i32, i32) {
    %c0_i32 = arith.constant 0 : i32
    %c0_i32_0 = arith.constant 0 : i32
    %c0_i32_1 = arith.constant 0 : i32
    return %c0_i32, %c0_i32_0 : i32, i32
  }
  func.func @transform_8(%arg0: i32) -> (i32, i32) {
    %c0_i32 = arith.constant 0 : i32
    %c0_i32_0 = arith.constant 0 : i32
    %c0_i32_1 = arith.constant 0 : i32
    return %c0_i32, %c0_i32_0 : i32, i32
  }
  func.func @transform_9(%arg0: i32) -> (i32, i32, i32) {
    %c0_i32 = arith.constant 0 : i32
    %c0_i32_0 = arith.constant 0 : i32
    %c0_i32_1 = arith.constant 0 : i32
    return %arg0, %c0_i32, %c0_i32_0 : i32, i32, i32
  }
}

</mosaic_0001>

<bundles_post_ra>
// kernel: tpu_custom_call.1
= control target key start
LH: loop header
LB: loop body
LE: loop exit
PB: predicated region body
PF: predicated region fallthrough
CT: control target
= control target key end

     0   :  { %14 = vsyncpa [#allocation3], 0  ;;  %s2571_s0 = inlined_call_operand.vmem [shape: f32[2,32,128], index: 0, kind: input, shape index: {}]   ;;  %s2572_s1 = inlined_call_operand.vmem [shape: f32[32,10], index: 1, kind: input, shape index: {}]   ;;  %s2573_s2 = inlined_call_operand.vmem [shape: f32[32,2], index: 2, kind: input, shape index: {}]   ;;  %s2574_s3 = inlined_call_operand.hbm [shape: f32[3,32], index: 3, kind: input, shape index: {}]   ;;  %s2575_s4 = inlined_call_operand.vmem [shape: bf16[32,32], index: 4, kind: input, shape index: {}]   ;;  %s2576_s5 = inlined_call_operand.vmem [shape: bf16[32,32], index: 5, kind: input, shape index: {}]   ;;  %s2577_s6 = inlined_call_operand.hbm [shape: bf16[32,32], index: 6, kind: input, shape index: {}]   ;;  %s2578_s7 = inlined_call_operand.hbm [shape: bf16[32,32], index: 7, kind: input, shape index: {}]   ;;  %s2579_s8 = inlined_call_operand.vmem [shape: bf16[32,32], index: 8, kind: input, shape index: {}]   ;;  %s2580_s9 = inlined_call_operand.hbm [shape: f32[2,32,128], index: 9, kind: output, shape index: {}]  }
   0x1   :  { %15 = vsyncpa [#allocation6], 0 }
   0x2   :  { %16 = vsyncpa [#allocation4], 0 }
   0x3   :  { %18 = vsyncpa [#allocation4 + $0x1], 0  ;;  %s2098_s30 = smov 0   ;;  %s2100_s10 = smov 0  }
   0x4   :  { %s2102_s11 = smov 0   ;;  %s2104_s12 = smov 0  }
   0x5 LB: > { %2589 = sst [smem:[#allocation12_spill]] %s2015_s30  ;;  %s2119_s13 = sadd.s32 4294967295, %s2027_s12   ;;  %s2027_s12 = sphi %s2104_s12, %s2608_s12   ;;  %s2023_s11 = sphi %s2102_s11, %s2610_s11   ;;  %s2019_s10 = sphi %s2100_s10, %s2612_s10   ;;  %s2015_s30 = sphi %s2098_s30, %s2611_s30  }
   0x6   : > { %2590 = sst [smem:[#allocation13_spill]] %s2023_s11  ;;  %s1569_s14 = sadd.s32 4294967294, %s2027_s12  }
   0x7   : > { %s2123_s15 = sadd.s32 1, %s2027_s12   ;;  %s225_s16 = sadd.s32 1, %s2023_s11 }
   0x8   : > { %2591 = sst [smem:[#allocation14_spill]] %s2123_s15  ;;  %s222_s17 = ssub.s32 %s2027_s12, %s2123_s15 }
   0x9   : > { %p235_p0 = scmp.ne.s32.totalorder %s2023_s11, %s2019_s10  ;;  %p223_p1 = scmp.eq.s32.totalorder %s222_s17, 0 }
   0xa   : > { %p236_p2 = scmp.eq.s32.totalorder %s2119_s13, 1  ;;  %p241_p3 = scmp.ne.s32.totalorder %s2019_s10, %s2015_s30 }
   0xb   : > { %p242_p4 = scmp.eq.s32.totalorder %s1569_s14, 1  ;;  %p1570_p7 = scmp.ge.s32.totalorder %s2027_s12, 1 }
   0xc   : > { %s2134_s18 = scalar_select %p223_p1, %s2023_s11, %s225_s16  }
   0xd   : > { %p2136_p5 = por %p236_p2, %p235_p0  ;;  %p2140_p6 = por %p242_p4, %p241_p3 }
   0xe   : > { %2592 = sst [smem:[#allocation15_spill]] %s2134_s18  ;;  %p249_p8 = scmp.lt.s32.totalorder %s2027_s12, 3 }
   0xf   : > { %s2593_s19 = scalar_select %p2136_p5, 1, 0 }
  0x10   : > { %s2594_s20 = scalar_select %p2140_p6, 1, 0 }
  0x11   : > { %p2581_p9 = scmp.eq.s32.totalorder %s2119_s13, 0  ;;  %p2147_p10 = pnand %p1570_p7, %p249_p8 }
  0x12   : > { %2595 = sst [smem:[#allocation16_spill]] %s2594_s20  ;;  %s2029_s22 = smov [#allocation5]  }
  0x13   : > { %s2596_s21 = scalar_select %p2147_p10, 1, 0 }
  0x14   : > { %s284_s23 = sshll.u32 %s2029_s22, 4  ;;  %p1711_p11 = pneg %p2147_p10  ;;  %s2153_s23 = int_to_ptr.vmem [resolvable:$true] %s284_s23 }
  0x15   : > { %s2030_s25 = smov [#allocation2]   ;;  %s2031_s27 = smov [#allocation7]  }
  0x16   : > { %p2157_p12 = pnand %p2581_p9, %p1711_p11  ;;  %s268_s26 = sshll.u32 %s2030_s25, 4  ;;  %s2161_s26 = int_to_ptr.vmem [resolvable:$true] %s268_s26 }
  0x17   : > { %s2163_s28 = sshll.u32 %s2031_s27, 4  ;;  %s1873_s16 = scalar_lea.hbm %s2577_s6, 256  ;;  %s298_s28 = int_to_ptr.vmem [resolvable:$true] %s2163_s28 }
  0x18   : > { %p1874_p13 = scmp.ne.s32.totalorder %s2577_s6, %s1873_s16  ;;  %p2173_p0 = pneg %p2157_p12 }
  0x19   : > { %p1880_p3 = scmp.lt.u32.totalorder %s1873_s16, %s2577_s6 }
  0x1a   : > { %p1876_p1 = pnand %p2173_p0, %p1874_p13 }
  0x1c   : > { %p1877_p2 = pneg %p1876_p1 }
  0x1e   : > { %p1882_p4 = pnand %p1880_p3, %p1877_p2 }
  0x20   : > { %1885 = shalt.err (!%p1882_p4)
}
  0x21   : > { %s1886_s29 = scalar_lea.vmem %s2153_s23, 256  ;;  %p1894_p9 = scmp.lt.s32.totalorder %s2153_s23, %s2153_s23 }
  0x22   : > { %p1887_p7 = scmp.ne.s32.totalorder %s2153_s23, %s1886_s29  ;;  %p1895_p6 = scmp.lt.s32.totalorder %s1886_s29, %s1886_s29 }
  0x24   : > { %p1889_p8 = pnand %p1887_p7, %p2173_p0  ;;  %p1896_p13 = por %p1895_p6, %p1894_p9 }
  0x26   : > { %p1890_p11 = pneg %p1889_p8 }
  0x28   : > { %p1897_p1 = pnand %p1896_p13, %p1890_p11 }
  0x2a   : > { %1900 = shalt.err (!%p1897_p1)
}
  0x2b   : > { %s2032_s14 = smov 64   ;;  %s2033_s16 = smov 4  }
  0x2c   : > { %1717 = dma.hbm_to_vmem [thread:$0]  (!%p2157_p12), %s2577_s6, 256, %s2153_s23, [#allocation6], %s2032_s14, %s2032_s14, %s2033_s16  }
  0x2d   : > { %s1901_s29 = scalar_lea.hbm %s2574_s3, 64 }
  0x2e   : > { %p1902_p6 = scmp.ne.s32.totalorder %s2574_s3, %s1901_s29  ;;  %p1908_p3 = scmp.lt.u32.totalorder %s1901_s29, %s2574_s3 }
  0x30   : > { %p1904_p9 = pnand %p1902_p6, %p2173_p0 }
  0x32   : > { %p1905_p2 = pneg %p1904_p9 }
  0x34   : > { %p1910_p4 = pnand %p1908_p3, %p1905_p2 }
  0x36   : > { %1913 = shalt.err (!%p1910_p4)
}
  0x37   : > { %s1914_s23 = scalar_lea.vmem %s2161_s26, 64  ;;  %p1922_p13 = scmp.lt.s32.totalorder %s2161_s26, %s2161_s26 }
  0x38   : > { %p1915_p7 = scmp.ne.s32.totalorder %s2161_s26, %s1914_s23  ;;  %p1923_p1 = scmp.lt.s32.totalorder %s1914_s23, %s1914_s23 }
  0x3a   : > { %p1917_p8 = pnand %p1915_p7, %p2173_p0  ;;  %p1924_p6 = por %p1923_p1, %p1922_p13 }
  0x3c   : > { %p1918_p11 = pneg %p1917_p8 }
  0x3e   : > { %p1925_p9 = pnand %p1924_p6, %p1918_p11 }
  0x40   : > { %1928 = shalt.err (!%p1925_p9)
}
  0x41   : > { %1714 = dma.hbm_to_vmem [thread:$0]  (!%p2157_p12), %s2574_s3, 64, %s2161_s26, [#allocation3]  }
  0x42   : > { %s1929_s17 = scalar_lea.hbm %s2578_s7, 256 }
  0x43   : > { %p1930_p2 = scmp.ne.s32.totalorder %s2578_s7, %s1929_s17  ;;  %p1936_p7 = scmp.lt.u32.totalorder %s1929_s17, %s2578_s7 }
  0x45   : > { %p1932_p3 = pnand %p1930_p2, %p2173_p0 }
  0x47   : > { %p1933_p4 = pneg %p1932_p3 }
  0x49   : > { %p1938_p8 = pnand %p1936_p7, %p1933_p4 }
  0x4b   : > { %1941 = shalt.err (!%p1938_p8)
}
  0x4c   : > { %s1942_s23 = scalar_lea.vmem %s298_s28, 256  ;;  %p1950_p6 = scmp.lt.s32.totalorder %s298_s28, %s298_s28 }
  0x4d   : > { %p1943_p11 = scmp.ne.s32.totalorder %s298_s28, %s1942_s23  ;;  %p1951_p9 = scmp.lt.s32.totalorder %s1942_s23, %s1942_s23 }
  0x4f   : > { %p1945_p13 = pnand %p1943_p11, %p2173_p0  ;;  %p1952_p5 = por %p1951_p9, %p1950_p6 }
  0x51   : > { %p1946_p1 = pneg %p1945_p13 }
  0x53   : > { %p1953_p10 = pnand %p1952_p5, %p1946_p1 }
  0x55   : > { %1956 = shalt.err (!%p1953_p10)
}
  0x56   : > { %1720 = dma.hbm_to_vmem [thread:$0]  (!%p2157_p12), %s2578_s7, 256, %s298_s28, [#allocation6], %s2032_s14, %s2032_s14, %s2033_s16  }
  0x57   : > { %p2599_p2 = scmp.ne.s32.totalorder %s2596_s21, 0 }
  0x58   : > { %p2600_p0 = scmp.eq.s32.totalorder (!%p2599_p2), %s2119_s13, 0 }
  0x59   : > { %324 = sbr.rel (%p2599_p2) target bundleno = 3572 (0xdf4), region = 56 }
  0x60   : > { %2002 = dma.done.wait (%p2600_p0), [#allocation3], 64   ;;  %p2601_p3 = pmov %p2600_p0 }
  0x61   : > { %p2602_p5 = pmov %p2600_p0 }
  0x62   : > { %2004 = vsyncadd (%p2601_p3), [#allocation3], 4294967232 }
  0x63   : > { %2006 = dma.done.wait (%p2602_p5), [#allocation6], 512   ;;  %p2603_p10 = pmov %p2600_p0 }
  0x64   : > { %p368_p4 = scmp.lt.s32.totalorder %s2119_s13, 1  ;;  %v2034_v20 = vmov 0   ;;  %v2282_v33 = vld [vmem:[%s2572_s1] sm:$0xff]  ;;  %v2290_v36 = vld [vmem:[%s2572_s1 + $0x8] sm:$0xff]  ;;  %v2296_v39 = vld [vmem:[%s2572_s1 + $0x10] sm:$0xff]  ;;  %s2035_s25 = smov 1  }
  0x65   : > { %2008 = vsyncadd (%p2603_p10), [#allocation6], 4294966784  ;;  %1782 = vset.pattern.permute.xlu0 %v2034_v20  ;;  %1783 = vset.pattern.permute.xlu1 %v2034_v20  ;;  %v2309_v45 = vld [vmem:[%s2572_s1 + $0x18] sm:$0xff]  ;;  %v2036_v48 = vmov 1   ;;  %v1809_v58 = vld [vmem:[%s2575_s4] sm:$0xff]   ;;  %vm544_vm0 = vcmask 261120  }
  0x66   : > { %s369_s18 = scalar_select %p368_p4, %s2119_s13, 1  ;;  %1643 = vmatprep.mubr.msk.bf16.mxu0 %vm544_vm0, %v1809_v58  ;;  %v2348_v59 = vld [vmem:[%s2573_s2 + $0x8] sm:$0xff]  ;;  %v2353_v60 = vld [vmem:[%s2573_s2] sm:$0xff]  ;;  %v2360_v61 = vld [vmem:[%s2573_s2 + $0x10] sm:$0xff] }
  0x67   : > { %v2365_v62 = vld [vmem:[%s2573_s2 + $0x18] sm:$0xff]  ;;  %s1610_s16 = sshll.u32 %s2119_s13, 9  ;;  %p2604_p7 = scmp.ne.s32.totalorder %s2593_s19, 0 }
  0x68   : > { %s1609_s24 = sshll.u32 %s369_s18, 5  ;;  %s2528_s20 = scalar_lea.hbm %s2580_s9, %s1610_s16 }
  0x69   : > { %s2257_s14 = scalar_lea.vmem %s2571_s0, %s1609_s24  ;;  %s2045_s22 = smov [#allocation8]  }
  0x6a   : > { %v2260_v0 = vld [vmem:[%s2257_s14] sm:$0xff]  ;;  %v2263_v1 = vld [vmem:[%s2257_s14 + $0x10] sm:$0xff]  ;;  %v2266_v2 = vld [vmem:[%s2257_s14 + $0x8] sm:$0xff]  ;;  %s1961_s27 = sshll.u32 %s2045_s22, 4  ;;  %s1962_s27 = int_to_ptr.vmem [resolvable:$false] %s1961_s27 }
  0x6b   : > { %387 = vadd.xlane.f32.xlu0 %v2260_v0  ;;  %391 = vadd.xlane.f32.xlu1 %v2263_v1  ;;  %v2271_v3 = vld [vmem:[%s2257_s14 + $0x18] sm:$0xff]  ;;  %s1963_s29 = scalar_lea.vmem %s1962_s27, 1024 }
  0x6f   : > { %389 = vadd.xlane.f32.xlu0 %v2266_v2  ;;  %393 = vadd.xlane.f32.xlu1 %v2271_v3 }
  0xf8   : > { %v388_v4 = vpop.xlane.xlu0 %387  ;;  %v392_v5 = vpop.xlane.xlu1 %391 }
  0xf9   : > { %v396_v6 = vmul.f32 0.0078125, %v388_v4  ;;  %v398_v7 = vmul.f32 0.0078125, %v392_v5 }
  0xfb   : > { %v400_v8 = vsub.f32 %v2260_v0, %v396_v6  ;;  %v402_v9 = vsub.f32 %v2263_v1, %v398_v7 }
  0xfc   : > { %v390_v10 = vpop.xlane.xlu0 %389  ;;  %v394_v11 = vpop.xlane.xlu1 %393 }
  0xfd   : > { %v397_v12 = vmul.f32 0.0078125, %v390_v10  ;;  %v404_v13 = vmul.f32 %v400_v8, %v400_v8  ;;  %v399_v14 = vmul.f32 0.0078125, %v394_v11  ;;  %v406_v15 = vmul.f32 %v402_v9, %v402_v9 }
  0xff   : > { %408 = vadd.xlane.f32.xlu0 %v404_v13  ;;  %v401_v16 = vsub.f32 %v2266_v2, %v397_v12  ;;  %v403_v17 = vsub.f32 %v2271_v3, %v399_v14 }
 0x101   : > { %v405_v18 = vmul.f32 %v401_v16, %v401_v16  ;;  %v407_v19 = vmul.f32 %v403_v17, %v403_v17 }
 0x103   : > { %412 = vadd.xlane.f32.xlu0 %v406_v15  ;;  %410 = vadd.xlane.f32.xlu1 %v405_v18 }
 0x107   : > { %414 = vadd.xlane.f32.xlu1 %v407_v19 }
 0x18c   : > { %v409_v21 = vpop.xlane.xlu0 %408 }
 0x18d   : > { %v416_v22 = vmul.f32 0.0078125, %v409_v21 }
 0x18f   : > { %v420_v23 = vadd.f32 0.001, %v416_v22 }
 0x190   : > { %v411_v24 = vpop.xlane.xlu1 %410  ;;  %v413_v25 = vpop.xlane.xlu0 %412 }
 0x191   : > { %1819 = vrsqrt.f32 %v420_v23  ;;  %v417_v26 = vmul.f32 0.0078125, %v411_v24  ;;  %v418_v27 = vmul.f32 0.0078125, %v413_v25  ;;  %v1810_v25 = vld [vmem:[%s2575_s4 + $0x8] sm:$0xff]  }
 0x193   : > { %v421_v28 = vadd.f32 0.001, %v417_v26  ;;  %v422_v29 = vadd.f32 0.001, %v418_v27 }
 0x194   : > { %v415_v30 = vpop.xlane.xlu1 %414 }
 0x195   : > { %1821 = vrsqrt.f32 %v421_v28  ;;  %v419_v31 = vmul.f32 0.0078125, %v415_v30 }
 0x196   : > { %1823 = vrsqrt.f32 %v422_v29 }
 0x197   : > { %v423_v32 = vadd.f32 0.001, %v419_v31 }
 0x199   : > { %1825 = vrsqrt.f32 %v423_v32 }
 0x19b   : > { %v1820_v34 = vpop.eup %1819 }
 0x19c   : > { %v2285_v35 = vmul.f32 %v1820_v34, %v2282_v33 }
 0x19e   : > { %v432_v37 = vmul.f32 %v2285_v35, %v396_v6 }
 0x19f   : > { %v1822_v38 = vpop.eup %1821 }
 0x1a0   : > { %v1824_v40 = vpop.eup %1823  ;;  %440 = vrot.lane.b32.xlu0 %v432_v37, %s2035_s25  ;;  %v2300_v41 = vmul.f32 %v1822_v38, %v2290_v36 }
 0x1a1   : > { %v2304_v43 = vmul.f32 %v1824_v40, %v2296_v39 }
 0x1a2   : > { %v433_v42 = vmul.f32 %v2300_v41, %v397_v12 }
 0x1a3   : > { %v1826_v44 = vpop.eup %1825  ;;  %v434_v46 = vmul.f32 %v2304_v43, %v398_v7 }
 0x1a4   : > { %442 = vrot.lane.b32.xlu1 %v433_v42, %s2035_s25  ;;  %458 = vperm.xlu0 %1782, %v2285_v35   ;;  %v2315_v47 = vmul.f32 %v1826_v44, %v2309_v45 }
 0x1a6   : > { %v435_v49 = vmul.f32 %v2315_v47, %v399_v14 }
 0x1a8   : > { %444 = vrot.lane.b32.xlu1 %v434_v46, %s2035_s25  ;;  %1785 = vset.pattern.permute.xlu0 %v2036_v48 }
 0x1ac   : > { %446 = vrot.lane.b32.xlu1 %v435_v49, %s2035_s25 }
 0x1b0   : > { %463 = vperm.xlu1 %1783, %v2300_v41  }
 0x1b4   : > { %468 = vperm.xlu1 %1783, %v2304_v43  }
 0x1b8   : > { %473 = vperm.xlu1 %1783, %v2315_v47  }
 0x1bc   : > { %1784 = vset.pattern.permute.xlu1 %v2036_v48 }
 0x212   : > { %v441_v50 = vpop.permute.xlu0 %440 }
 0x213   : > { %v2326_v51 = vsub.f32 %v2282_v33, %v441_v50 }
 0x215   : > { %482 = vperm.xlu1 %1784, %v2326_v51  }
 0x216   : > { %v443_v52 = vpop.permute.xlu1 %442 }
 0x217   : > { %v2330_v53 = vsub.f32 %v2290_v36, %v443_v52 }
 0x219   : > { %487 = vperm.xlu0 %1785, %v2330_v53  }
 0x21a   : > { %v445_v54 = vpop.permute.xlu1 %444 }
 0x21b   : > { %v2334_v55 = vsub.f32 %v2296_v39, %v445_v54 }
 0x21d   : > { %492 = vperm.xlu0 %1785, %v2334_v55  }
 0x21e   : > { %v447_v56 = vpop.permute.xlu1 %446 }
 0x21f   : > { %v2338_v57 = vsub.f32 %v2309_v45, %v447_v56 }
 0x221   : > { %497 = vperm.xlu1 %1784, %v2338_v57   ;;  %1786 = vset.pattern.permute.xlu0 %v2034_v20 }
 0x222   : > { %516 = vperm.xlu0 %1786, %v2353_v60  }
 0x223   : > { %v459_v6 = vpop.permute.xlu0 %458 }
 0x224   : > { %v476_v8 = vmul.f32 %v459_v6, %v2260_v0 }
 0x225   : > { %1787 = vset.pattern.permute.xlu1 %v2034_v20 }
 0x226   : > { %521 = vperm.xlu1 %1787, %v2348_v59   ;;  %531 = vperm.xlu0 %1786, %v2365_v62  }
 0x22a   : > { %526 = vperm.xlu1 %1787, %v2360_v61  }
 0x22f   : > { %v464_v63 = vpop.permute.xlu1 %463 }
 0x230   : > { %v477_v9 = vmul.f32 %v464_v63, %v2266_v2 }
 0x233   : > { %v469_v4 = vpop.permute.xlu1 %468 }
 0x234   : > { %v478_v16 = vmul.f32 %v469_v4, %v2263_v1 }
 0x237   : > { %v474_v5 = vpop.permute.xlu1 %473 }
 0x238   : > { %v479_v18 = vmul.f32 %v474_v5, %v2271_v3 }
 0x294   : > { %v483_v7 = vpop.permute.xlu1 %482 }
 0x295   : > { %v500_v10 = vadd.f32 %v483_v7, %v476_v8 }
 0x297   : > { %v504_v13 = vmax.f32 %v500_v10, 0.0 }
 0x298   : > { %v488_v11 = vpop.permute.xlu0 %487 }
 0x299   : > { %v501_v12 = vadd.f32 %v488_v11, %v477_v9  ;;  %v636_v11 = vpack.c.bf16 %v2266_v2, %v2260_v0 }
 0x29b   : > { %v505_v14 = vmax.f32 %v501_v12, 0.0  ;;  %1651 = vmatprep.mubr.bf16.mxu1 %v636_v11 }
 0x29c   : > { %v493_v15 = vpop.permute.xlu0 %492 }
 0x29d   : > { %v512_v17 = vpack.c.bf16 %v505_v14, %v504_v13  ;;  %v502_v19 = vadd.f32 %v493_v15, %v478_v16 }
 0x29f   : > { %1639 = vmatprep.subr.bf16.mxu0 %v512_v17  ;;  %v506_v22 = vmax.f32 %v502_v19, 0.0 }
 0x2a0   : > { %v498_v20 = vpop.permute.xlu1 %497  ;;  %1640 = vmatpush3.bf16.msra.mxu0 %v512_v17 }
 0x2a1   : > { %v503_v21 = vadd.f32 %v498_v20, %v479_v18  ;;  %v517_v28 = vpop.permute.xlu0 %516 }
 0x2a3   : > { %v507_v23 = vmax.f32 %v503_v21, 0.0 }
 0x2a5   : > { %v513_v24 = vpack.c.bf16 %v507_v23, %v506_v22  ;;  %v522_v26 = vpop.permute.xlu1 %521  ;;  %v532_v40 = vpop.permute.xlu0 %531 }
 0x2a7   : > { %1641 = vmatprep.subr.bf16.mxu0 %v513_v24 }
 0x2a8   : > { %1642 = vmatpush3.bf16.msra.mxu0 %v513_v24  ;;  %v637_v24 = vpack.c.bf16 %v2271_v3, %v2263_v1 }
 0x2a9   : > { %v527_v37 = vpop.permute.xlu1 %526 }
 0x2ab   : > { %1644 = vmatmul.mubr.msk.bf16.vlgmr.msra.gmra.mrb[0].mxu0 %vm544_vm0, %v1810_v25 }
 0x37e   : > { %v1645_v27 = vpop.f32.mrb[0].mxu0 }
 0x37f   : > { %v585_v29 = vpop.f32.mrb[1].mxu0  ;;  %v594_v38 = vadd.f32 %v1645_v27, %v527_v37 }
 0x380   : > { %v586_v30 = vadd.f32 %v585_v29, %v517_v28  ;;  %v1646_v31 = vpop.f32.mrb[2].mxu0 }
 0x381   : > { %v588_v32 = vpop.f32.mrb[3].mxu0  ;;  %v597_v42 = vadd.f32 %v1646_v31, %v532_v40 }
 0x382   : > { %v589_v34 = vadd.f32 %v588_v32, %v522_v26  ;;  %600 = vmax.xlane.f32.xlu1 %v586_v30 }
 0x384   : > { %602 = vmax.xlane.f32.xlu0 %v589_v34 }
 0x388   : > { %604 = vmax.xlane.f32.xlu0 %v594_v38 }
 0x38c   : > { %606 = vmax.xlane.f32.xlu0 %v597_v42 }
 0x40f   : > { %v601_v44 = vpop.xlane.xlu1 %600 }
 0x410   : > { %v608_v46 = vsub.f32 %v586_v30, %v601_v44 }
 0x411   : > { %v603_v49 = vpop.xlane.xlu0 %602 }
 0x412   : > { %v612_v50 = vmul.f32 1.442695, %v608_v46  ;;  %v609_v52 = vsub.f32 %v589_v34, %v603_v49 }
 0x414   : > { %1827 = vpow2.f32 %v612_v50  ;;  %v614_v54 = vmul.f32 1.442695, %v609_v52 }
 0x415   : > { %v605_v56 = vpop.xlane.xlu0 %604 }
 0x416   : > { %1829 = vpow2.f32 %v614_v54  ;;  %v610_v58 = vsub.f32 %v594_v38, %v605_v56 }
 0x418   : > { %v616_v63 = vmul.f32 1.442695, %v610_v58 }
 0x419   : > { %v607_v4 = vpop.xlane.xlu0 %606 }
 0x41a   : > { %1831 = vpow2.f32 %v616_v63  ;;  %v611_v5 = vsub.f32 %v597_v42, %v607_v4 }
 0x41c   : > { %v618_v6 = vmul.f32 1.442695, %v611_v5 }
 0x41e   : > { %v1828_v7 = vpop.eup %1827  ;;  %1833 = vpow2.f32 %v618_v6 }
 0x41f   : > { %620 = vadd.xlane.f32.xlu1 %v1828_v7 }
 0x420   : > { %v1830_v8 = vpop.eup %1829 }
 0x421   : > { %622 = vadd.xlane.f32.xlu0 %v1830_v8 }
 0x424   : > { %v1832_v9 = vpop.eup %1831 }
 0x425   : > { %624 = vadd.xlane.f32.xlu1 %v1832_v9 }
 0x428   : > { %v1834_v10 = vpop.eup %1833 }
 0x429   : > { %626 = vadd.xlane.f32.xlu0 %v1834_v10 }
 0x4ac   : > { %v621_v12 = vpop.xlane.xlu1 %620 }
 0x4ad   : > { %1835 = vrcp.f32 %v621_v12 }
 0x4ae   : > { %v623_v13 = vpop.xlane.xlu0 %622 }
 0x4af   : > { %1837 = vrcp.f32 %v623_v13 }
 0x4b2   : > { %v625_v14 = vpop.xlane.xlu1 %624 }
 0x4b3   : > { %1839 = vrcp.f32 %v625_v14 }
 0x4b6   : > { %v627_v15 = vpop.xlane.xlu0 %626 }
 0x4b7   : > { %v1836_v16 = vpop.eup %1835  ;;  %1841 = vrcp.f32 %v627_v15 }
 0x4b8   : > { %v632_v18 = vmul.f32 %v1836_v16, %v1828_v7 }
 0x4b9   : > { %v1838_v17 = vpop.eup %1837 }
 0x4ba   : > { %v633_v19 = vmul.f32 %v1838_v17, %v1830_v8  ;;  %v2037_v8 = vmov 2  }
 0x4bb   : > { %1789 = vset.pattern.permute.xlu0 %v2037_v8  ;;  %1788 = vset.pattern.permute.xlu1 %v2037_v8 }
 0x4bc   : > { %v638_v20 = vpack.c.bf16 %v633_v19, %v632_v18 }
 0x4bd   : > { %v1840_v21 = vpop.eup %1839 }
 0x4be   : > { %1647 = vmatprep.subr.bf16.mxu1 %v638_v20  ;;  %v634_v23 = vmul.f32 %v1840_v21, %v1832_v9 }
 0x4bf   : > { %1648 = vmatpush3.bf16.xpose.msra.mxu1 %v638_v20 }
 0x4c1   : > { %v1842_v22 = vpop.eup %1841 }
 0x4c2   : > { %v635_v0 = vmul.f32 %v1842_v22, %v1834_v10 }
 0x4c4   : > { %v639_v2 = vpack.c.bf16 %v635_v0, %v634_v23 }
 0x4c6   : > { %1649 = vmatprep.subr.bf16.mxu1 %v639_v2 }
 0x4c7   : > { %1650 = vmatpush3.bf16.xpose.msra.mxu1 %v639_v2 }
 0x4ce   : > { %1652 = vmatmul.mubr.bf16.vlgmr.msra.gmra.mrb[0].mxu1 %v637_v24 }
 0x5a1   : > { %v2381_v25 = vpop.f32.mrb[0].mxu1 }
 0x5a2   : > { %v2383_v26 = vpop.f32.mrb[1].mxu1  ;;  %v695_v1 = vsel %vm544_vm0, %v2381_v25, 0.0 }
 0x5a3   : > { %v2385_v27 = vpop.f32.mrb[2].mxu1  ;;  %v689_v28 = vsel %vm544_vm0, %v2383_v26, 0.0 }
 0x5a4   : > { %690 = vadd.xlane.f32.xlu1 %v689_v28  ;;  %v2389_v29 = vpop.f32.mrb[3].mxu1  ;;  %v698_v3 = vsel %vm544_vm0, %v2385_v27, 0.0 }
 0x5a5   : > { %v692_v30 = vsel %vm544_vm0, %v2389_v29, 0.0 }
 0x5a6   : > { %693 = vadd.xlane.f32.xlu0 %v692_v30 }
 0x5a8   : > { %696 = vadd.xlane.f32.xlu1 %v695_v1 }
 0x5aa   : > { %699 = vadd.xlane.f32.xlu0 %v698_v3 }
 0x631   : > { %v691_v31 = vpop.xlane.xlu1 %690 }
 0x632   : > { %v702_v32 = vmul.f32 0.03125, %v691_v31 }
 0x633   : > { %v694_v34 = vpop.xlane.xlu0 %693 }
 0x634   : > { %v706_v37 = vsub.f32 %v2383_v26, %v702_v32  ;;  %v703_v38 = vmul.f32 0.03125, %v694_v34 }
 0x635   : > { %v697_v40 = vpop.xlane.xlu1 %696 }
 0x636   : > { %v707_v42 = vsub.f32 %v2389_v29, %v703_v38  ;;  %v704_v44 = vmul.f32 0.03125, %v697_v40  ;;  %v710_v46 = vmul.f32 %v706_v37, %v706_v37 }
 0x637   : > { %v700_v49 = vpop.xlane.xlu0 %699 }
 0x638   : > { %v708_v50 = vsub.f32 %v2381_v25, %v704_v44  ;;  %v705_v52 = vmul.f32 0.03125, %v700_v49  ;;  %v714_v54 = vsel %vm544_vm0, %v710_v46, 0.0  ;;  %v711_v56 = vmul.f32 %v707_v42, %v707_v42 }
 0x639   : > { %715 = vadd.xlane.f32.xlu1 %v714_v54  ;;  %v2039_v54 = vmov 4  }
 0x63a   : > { %v709_v58 = vsub.f32 %v2385_v27, %v705_v52  ;;  %v717_v63 = vsel %vm544_vm0, %v711_v56, 0.0  ;;  %v712_v4 = vmul.f32 %v708_v50, %v708_v50 }
 0x63b   : > { %718 = vadd.xlane.f32.xlu0 %v717_v63 }
 0x63c   : > { %v720_v5 = vsel %vm544_vm0, %v712_v4, 0.0  ;;  %v713_v6 = vmul.f32 %v709_v58, %v709_v58 }
 0x63d   : > { %721 = vadd.xlane.f32.xlu1 %v720_v5 }
 0x63e   : > { %v723_v7 = vsel %vm544_vm0, %v713_v6, 0.0 }
 0x63f   : > { %724 = vadd.xlane.f32.xlu0 %v723_v7 }
 0x6c6   : > { %v716_v9 = vpop.xlane.xlu1 %715 }
 0x6c7   : > { %v726_v10 = vmul.f32 0.03125, %v716_v9 }
 0x6c8   : > { %v719_v11 = vpop.xlane.xlu0 %718 }
 0x6c9   : > { %v730_v12 = vadd.f32 0.001, %v726_v10  ;;  %v727_v13 = vmul.f32 0.03125, %v719_v11 }
 0x6ca   : > { %v722_v14 = vpop.xlane.xlu1 %721 }
 0x6cb   : > { %1843 = vrsqrt.f32 %v730_v12  ;;  %v731_v15 = vadd.f32 0.001, %v727_v13  ;;  %v728_v16 = vmul.f32 0.03125, %v722_v14 }
 0x6cc   : > { %v725_v17 = vpop.xlane.xlu0 %724 }
 0x6cd   : > { %1845 = vrsqrt.f32 %v731_v15  ;;  %v732_v18 = vadd.f32 0.001, %v728_v16  ;;  %v729_v19 = vmul.f32 0.03125, %v725_v17 }
 0x6cf   : > { %1847 = vrsqrt.f32 %v732_v18  ;;  %v733_v20 = vadd.f32 0.001, %v729_v19 }
 0x6d1   : > { %1849 = vrsqrt.f32 %v733_v20 }
 0x6d5   : > { %v1844_v21 = vpop.eup %1843 }
 0x6d6   : > { %v738_v22 = vmul.f32 %v1844_v21, %v2282_v33 }
 0x6d7   : > { %v1846_v23 = vpop.eup %1845 }
 0x6d8   : > { %v742_v0 = vmul.f32 %v738_v22, %v702_v32  ;;  %v739_v2 = vmul.f32 %v1846_v23, %v2290_v36  ;;  %v2038_v32 = vmov 3   ;;  %v1813_v23 = vld [vmem:[#allocation5] sm:$0xff]  }
 0x6d9   : > { %v1848_v24 = vpop.eup %1847 }
 0x6da   : > { %750 = vrot.lane.b32.xlu1 %v742_v0, %s2035_s25  ;;  %v743_v28 = vmul.f32 %v739_v2, %v703_v38  ;;  %v740_v30 = vmul.f32 %v1848_v24, %v2296_v39  ;;  %v1812_v0 = vld [vmem:[%s2576_s5 + $0x8] sm:$0xff]  }
 0x6db   : > { %v1850_v1 = vpop.eup %1849  ;;  %v1814_v24 = vld [vmem:[#allocation5 + $0x8] sm:$0xff]  }
 0x6dc   : > { %752 = vrot.lane.b32.xlu0 %v743_v28, %s2035_s25  ;;  %v744_v3 = vmul.f32 %v740_v30, %v704_v44  ;;  %v741_v31 = vmul.f32 %v1850_v1, %v2309_v45  ;;  %v959_v28 = vsel %vm544_vm0, %v1814_v24, 0 }
 0x6de   : > { %754 = vrot.lane.b32.xlu1 %v744_v3, %s2035_s25  ;;  %v745_v34 = vmul.f32 %v741_v31, %v705_v52  ;;  %v1811_v52 = vld [vmem:[%s2576_s5] sm:$0xff]  }
 0x6df   : > { %1659 = vmatprep.mubr.msk.bf16.mxu0 %vm544_vm0, %v1811_v52 }
 0x6e0   : > { %773 = vperm.xlu0 %1789, %v739_v2   ;;  %v956_v2 = vsel %vm544_vm0, %v1813_v23, 0 }
 0x6e2   : > { %756 = vrot.lane.b32.xlu1 %v745_v34, %s2035_s25 }
 0x6e4   : > { %778 = vperm.xlu0 %1789, %v740_v30   ;;  %v909_v30 = vlaneseq }
 0x6e6   : > { %768 = vperm.xlu1 %1788, %v738_v22   ;;  %v910_v1 = vshrl.u32 %v909_v30, 7 }
 0x6e8   : > { %1790 = vset.pattern.permute.xlu0 %v2038_v32  ;;  %v937_v3 = vsub.s32 2, %v910_v1 }
 0x6ea   : > { %783 = vperm.xlu1 %1788, %v741_v31   ;;  %v386_v31 = vld [vmem:[#allocation2] sm:$0x7] }
 0x6eb   : > { %v938_v34 = vrot.slane %v386_v31, %v937_v3 }
 0x6ee   : > { %1791 = vset.pattern.permute.xlu1 %v2038_v32 }
 0x74c   : > { %v751_v37 = vpop.permute.xlu1 %750 }
 0x74d   : > { %v762_v38 = vsub.f32 %v2282_v33, %v751_v37  ;;  %v911_v37 = vsub.s32 0, %v910_v1 }
 0x74e   : > { %v753_v40 = vpop.permute.xlu0 %752 }
 0x74f   : > { %792 = vperm.xlu1 %1791, %v762_v38   ;;  %v763_v44 = vsub.f32 %v2290_v36, %v753_v40  ;;  %v919_v40 = vsub.s32 1, %v910_v1 }
 0x750   : > { %v755_v42 = vpop.permute.xlu1 %754 }
 0x751   : > { %v764_v46 = vsub.f32 %v2296_v39, %v755_v42  ;;  %v912_v42 = vrot.slane %v386_v31, %v911_v37 }
 0x753   : > { %802 = vperm.xlu0 %1790, %v764_v46   ;;  %797 = vperm.xlu1 %1791, %v763_v44  }
 0x754   : > { %v757_v49 = vpop.permute.xlu1 %756 }
 0x755   : > { %v765_v50 = vsub.f32 %v2309_v45, %v757_v49 }
 0x757   : > { %807 = vperm.xlu1 %1791, %v765_v50   ;;  %1793 = vset.pattern.permute.xlu0 %v2039_v54 }
 0x758   : > { %831 = vperm.xlu0 %1793, %v2290_v36  }
 0x75b   : > { %1792 = vset.pattern.permute.xlu1 %v2039_v54  ;;  %v920_v54 = vrot.slane %v386_v31, %v919_v40 }
 0x75c   : > { %826 = vperm.xlu1 %1792, %v2282_v33  }
 0x75f   : > { %v774_v58 = vpop.permute.xlu0 %773 }
 0x760   : > { %836 = vperm.xlu1 %1792, %v2296_v39   ;;  %v787_v7 = vmul.f32 %v774_v58, %v2389_v29 }
 0x763   : > { %v779_v4 = vpop.permute.xlu0 %778 }
 0x764   : > { %841 = vperm.xlu1 %1792, %v2309_v45   ;;  %v788_v11 = vmul.f32 %v2381_v25, %v779_v4 }
 0x765   : > { %v769_v56 = vpop.permute.xlu1 %768 }
 0x766   : > { %v786_v6 = vmul.f32 %v769_v56, %v2383_v26 }
 0x769   : > { %v784_v63 = vpop.permute.xlu1 %783 }
 0x76a   : > { %v789_v13 = vmul.f32 %v2385_v27, %v784_v63 }
 0x7ce   : > { %v793_v5 = vpop.permute.xlu1 %792 }
 0x7cf   : > { %v810_v8 = vadd.f32 %v793_v5, %v786_v6 }
 0x7d1   : > { %v814_v14 = vmax.f32 %v810_v8, 0.0 }
 0x7d2   : > { %v798_v9 = vpop.permute.xlu1 %797  ;;  %v803_v10 = vpop.permute.xlu0 %802 }
 0x7d3   : > { %v811_v12 = vadd.f32 %v798_v9, %v787_v7  ;;  %v812_v16 = vadd.f32 %v803_v10, %v788_v11 }
 0x7d5   : > { %v815_v15 = vmax.f32 %v811_v12, 0.0  ;;  %v816_v20 = vmax.f32 %v812_v16, 0.0 }
 0x7d6   : > { %v808_v17 = vpop.permute.xlu1 %807 }
 0x7d7   : > { %v822_v18 = vpack.c.bf16 %v815_v15, %v814_v14  ;;  %v813_v19 = vadd.f32 %v808_v17, %v789_v13  ;;  %v832_v50 = vpop.permute.xlu0 %831 }
 0x7d9   : > { %v817_v21 = vmax.f32 %v813_v19, 0.0  ;;  %1655 = vmatprep.subr.bf16.mxu0 %v822_v18 }
 0x7da   : > { %1656 = vmatpush3.bf16.msra.mxu0 %v822_v18 }
 0x7db   : > { %v823_v22 = vpack.c.bf16 %v817_v21, %v816_v20  ;;  %v827_v32 = vpop.permute.xlu1 %826 }
 0x7dd   : > { %1657 = vmatprep.subr.bf16.mxu0 %v823_v22 }
 0x7de   : > { %1658 = vmatpush3.bf16.msra.mxu0 %v823_v22 }
 0x7df   : > { %1695 = vmatprep.subr.msk.bf16.mxu0 %vm544_vm0, %v1813_v23  ;;  %v837_v38 = vpop.permute.xlu1 %836 }
 0x7e1   : > { %1660 = vmatmul.mubr.msk.bf16.vlgmr.msra.gmra.mrb[4].mxu0 %vm544_vm0, %v1812_v0 }
 0x7e3   : > { %v842_v52 = vpop.permute.xlu1 %841 }
 0x7e7   : > { %1664 = vmatpush3.bf16.xpose.msra.mxu0 %v956_v2 }
 0x7e8   : > { %1696 = vmatprep.subr.msk.bf16.mxu0 %vm544_vm0, %v1814_v24 }
 0x7ef   : > { %1666 = vmatpush3.bf16.xpose.msra.mxu0 %v959_v28 }
 0x8b4   : > { %v1661_v44 = vpop.f32.mrb[4].mxu0 }
 0x8b5   : > { %v903_v46 = vadd.f32 %v1661_v44, %v837_v38  ;;  %v894_v49 = vpop.f32.mrb[5].mxu0 }
 0x8b6   : > { %v895_v56 = vadd.f32 %v894_v49, %v827_v32  ;;  %v1662_v58 = vpop.f32.mrb[6].mxu0 }
 0x8b7   : > { %v915_v63 = vmul.f32 %v912_v42, %v903_v46  ;;  %v906_v4 = vadd.f32 %v1662_v58, %v842_v52  ;;  %v897_v5 = vpop.f32.mrb[7].mxu0 }
 0x8b8   : > { %v913_v6 = vmul.f32 %v912_v42, %v895_v56  ;;  %v898_v7 = vadd.f32 %v897_v5, %v832_v50 }
 0x8b9   : > { %v916_v8 = vmul.f32 %v912_v42, %v906_v4  ;;  %v923_v11 = vadd.f32 %v920_v54, %v915_v63 }
 0x8ba   : > { %v921_v9 = vadd.f32 %v920_v54, %v913_v6  ;;  %v914_v10 = vmul.f32 %v912_v42, %v898_v7 }
 0x8bb   : > { %v924_v12 = vadd.f32 %v920_v54, %v916_v8  ;;  %v927_v17 = vmax.f32 %v923_v11, 0.0 }
 0x8bc   : > { %v922_v13 = vadd.f32 %v920_v54, %v914_v10  ;;  %v925_v15 = vmax.f32 %v921_v9, 0.0 }
 0x8bd   : > { %v928_v14 = vmax.f32 %v924_v12, 0.0 }
 0x8be   : > { %v926_v16 = vmax.f32 %v922_v13, 0.0  ;;  %v2040_v13 = vmov 5  }
 0x8bf   : > { %v934_v19 = vpack.c.bf16 %v928_v14, %v927_v17  ;;  %1794 = vset.pattern.permute.xlu0 %v2040_v13  ;;  %1795 = vset.pattern.permute.xlu1 %v2040_v13 }
 0x8c0   : > { %v933_v18 = vpack.c.bf16 %v926_v16, %v925_v15 }
 0x8c2   : > { %1667 = vmatprep.mubr.msk.bf16.mxu0 %vm544_vm0, %v933_v18 }
 0x8c3   : > { %1668 = vmatmul.mubr.msk.bf16.vlgmr.msra.gmra.mrb[8].mxu0 %vm544_vm0, %v934_v19 }
 0x996   : > { %v1669_v20 = vpop.f32.mrb[8].mxu0 }
 0x997   : > { %v1004_v21 = vadd.f32 %v1669_v20, %v938_v34  ;;  %v995_v22 = vpop.f32.mrb[9].mxu0 }
 0x998   : > { %v996_v23 = vadd.f32 %v995_v22, %v938_v34  ;;  %v1670_v0 = vpop.f32.mrb[10].mxu0 }
 0x999   : > { %v1007_v2 = vadd.f32 %v1670_v0, %v938_v34  ;;  %v998_v24 = vpop.f32.mrb[11].mxu0  ;;  %v2441_v1 = vadd.f32 %v1004_v21, %v903_v46 }
 0x99a   : > { %v2439_v28 = vadd.f32 %v996_v23, %v895_v56  ;;  %v999_v30 = vadd.f32 %v998_v24, %v938_v34 }
 0x99b   : > { %v2449_v37 = vadd.f32 %v1007_v2, %v906_v4  ;;  %v1020_v38 = vsel %vm544_vm0, %v2441_v1, 0.0 }
 0x99c   : > { %v2443_v3 = vadd.f32 %v999_v30, %v898_v7  ;;  %v1014_v31 = vsel %vm544_vm0, %v2439_v28, 0.0 }
 0x99d   : > { %1015 = vadd.xlane.f32.xlu0 %v1014_v31  ;;  %v1023_v34 = vsel %vm544_vm0, %v2449_v37, 0.0 }
 0x99e   : > { %v1017_v32 = vsel %vm544_vm0, %v2443_v3, 0.0 }
 0x99f   : > { %1018 = vadd.xlane.f32.xlu1 %v1017_v32 }
 0x9a1   : > { %1021 = vadd.xlane.f32.xlu0 %v1020_v38 }
 0x9a5   : > { %1024 = vadd.xlane.f32.xlu0 %v1023_v34 }
 0xa2a   : > { %v1016_v40 = vpop.xlane.xlu0 %1015 }
 0xa2b   : > { %v1026_v42 = vmul.f32 0.03125, %v1016_v40 }
 0xa2c   : > { %v1019_v44 = vpop.xlane.xlu1 %1018 }
 0xa2d   : > { %v1030_v46 = vsub.f32 %v2439_v28, %v1026_v42  ;;  %v1027_v49 = vmul.f32 0.03125, %v1019_v44 }
 0xa2e   : > { %v1022_v50 = vpop.xlane.xlu0 %1021 }
 0xa2f   : > { %v1031_v52 = vsub.f32 %v2443_v3, %v1027_v49  ;;  %v1028_v54 = vmul.f32 0.03125, %v1022_v50  ;;  %v1034_v56 = vmul.f32 %v1030_v46, %v1030_v46 }
 0xa31   : > { %v1032_v58 = vsub.f32 %v2441_v1, %v1028_v54  ;;  %v1038_v63 = vsel %vm544_vm0, %v1034_v56, 0.0  ;;  %v1035_v4 = vmul.f32 %v1031_v52, %v1031_v52  ;;  %v2041_v56 = vmov 8  }
 0xa32   : > { %1039 = vadd.xlane.f32.xlu0 %v1038_v63  ;;  %v1025_v5 = vpop.xlane.xlu0 %1024 }
 0xa33   : > { %v1029_v6 = vmul.f32 0.03125, %v1025_v5  ;;  %v1041_v7 = vsel %vm544_vm0, %v1035_v4, 0.0  ;;  %v1036_v8 = vmul.f32 %v1032_v58, %v1032_v58  ;;  %v2042_v58 = vmov 6  }
 0xa34   : > { %1042 = vadd.xlane.f32.xlu1 %v1041_v7 }
 0xa35   : > { %v1033_v9 = vsub.f32 %v2449_v37, %v1029_v6  ;;  %v1044_v10 = vsel %vm544_vm0, %v1036_v8, 0.0 }
 0xa36   : > { %1045 = vadd.xlane.f32.xlu0 %v1044_v10  ;;  %v1869_v10 = vld [vmem:[%s2257_s14] sm:$0xff] }
 0xa37   : > { %v1037_v11 = vmul.f32 %v1033_v9, %v1033_v9 }
 0xa39   : > { %v1047_v12 = vsel %vm544_vm0, %v1037_v11, 0.0 }
 0xa3a   : > { %1048 = vadd.xlane.f32.xlu1 %v1047_v12 }
 0xabf   : > { %v1040_v14 = vpop.xlane.xlu0 %1039 }
 0xac0   : > { %v1050_v15 = vmul.f32 0.03125, %v1040_v14 }
 0xac1   : > { %v1043_v16 = vpop.xlane.xlu1 %1042 }
 0xac2   : > { %v1054_v17 = vadd.f32 0.001, %v1050_v15  ;;  %v1051_v18 = vmul.f32 0.03125, %v1043_v16  ;;  %v1870_v16 = vld [vmem:[%s2257_s14 + $0x8] sm:$0xff] }
 0xac3   : > { %v1046_v19 = vpop.xlane.xlu0 %1045 }
 0xac4   : > { %1851 = vrsqrt.f32 %v1054_v17  ;;  %v1055_v20 = vadd.f32 0.001, %v1051_v18  ;;  %v1052_v21 = vmul.f32 0.03125, %v1046_v19 }
 0xac6   : > { %v1056_v22 = vadd.f32 0.001, %v1052_v21  ;;  %1853 = vrsqrt.f32 %v1055_v20 }
 0xac7   : > { %v1049_v23 = vpop.xlane.xlu1 %1048 }
 0xac8   : > { %1855 = vrsqrt.f32 %v1056_v22  ;;  %v1053_v0 = vmul.f32 0.03125, %v1049_v23 }
 0xaca   : > { %v1057_v2 = vadd.f32 0.001, %v1053_v0 }
 0xacc   : > { %1857 = vrsqrt.f32 %v1057_v2 }
 0xace   : > { %v1852_v24 = vpop.eup %1851 }
 0xacf   : > { %v1062_v30 = vmul.f32 %v1852_v24, %v2282_v33 }
 0xad0   : > { %v1854_v31 = vpop.eup %1853 }
 0xad1   : > { %v1066_v32 = vmul.f32 %v1062_v30, %v1026_v42  ;;  %v1063_v44 = vmul.f32 %v1854_v31, %v2290_v36  ;;  %v1817_v31 = vld [vmem:[%s2579_s8] sm:$0xff]  }
 0xad2   : > { %v1856_v38 = vpop.eup %1855 }
 0xad3   : > { %1074 = vrot.lane.b32.xlu0 %v1066_v32, %s2035_s25  ;;  %v1064_v34 = vmul.f32 %v1856_v38, %v2296_v39  ;;  %v1067_v50 = vmul.f32 %v1063_v44, %v1027_v49  ;;  %v2043_v49 = vmov 9   ;;  %v1871_v32 = vld [vmem:[%s2257_s14 + $0x10] sm:$0xff] }
 0xad5   : > { %v1068_v40 = vmul.f32 %v1064_v34, %v1028_v54 }
 0xad6   : > { %v1858_v46 = vpop.eup %1857 }
 0xad7   : > { %1092 = vperm.xlu0 %1794, %v1062_v30   ;;  %1078 = vrot.lane.b32.xlu1 %v1068_v40, %s2035_s25  ;;  %v1065_v52 = vmul.f32 %v1858_v46, %v2309_v45  ;;  %v1816_v30 = vld [vmem:[#allocation7 + $0x8] sm:$0xff]  }
 0xad8   : > { %v1872_v46 = vld [vmem:[%s2257_s14 + $0x18] sm:$0xff]  ;;  %s365_s14 = sand.u32 1, %s2019_s10  }
 0xad9   : > { %v1069_v42 = vmul.f32 %v1065_v52, %v1029_v6  ;;  %s1579_s24 = sshll.u32 %s365_s14, 5  ;;  %s2530_s17 = scalar_lea.sflag [#allocation4], %s365_s14 }
 0xada   : > { %s367_s28 = scalar_lea.vmem [#allocation8], %s1579_s24 }
 0xadb   : > { %1796 = vset.pattern.permute.xlu0 %v2041_v56  ;;  %1076 = vrot.lane.b32.xlu1 %v1067_v50, %s2035_s25  ;;  %s1476_s21 = sshll.u32 %s367_s28, 4  ;;  %s2523_s21 = int_to_ptr.vmem [resolvable:$true] %s1476_s21 }
 0xadc   : > { %1234 = vperm.xlu0 %1796, %v2285_v35   ;;  %s1957_s13 = scalar_lea.vmem %s2523_s21, 512  ;;  %p1964_p13 = scmp.lt.s32.totalorder %s2523_s21, %s1962_s27 }
 0xadd   : > { %p1958_p12 = scmp.ne.s32.totalorder %s2523_s21, %s1957_s13  ;;  %p1965_p1 = scmp.lt.s32.totalorder %s1963_s29, %s1957_s13 }
 0xadf   : > { %1080 = vrot.lane.b32.xlu1 %v1069_v42, %s2035_s25  ;;  %p1959_p8 = pnand %p1958_p12, %p2604_p7  ;;  %p1966_p6 = por %p1965_p1, %p1964_p13 }
 0xae0   : > { %1799 = vset.pattern.permute.xlu0 %v2042_v58 }
 0xae1   : > { %p1960_p11 = pneg %p1959_p8 }
 0xae3   : > { %1097 = vperm.xlu1 %1795, %v1063_v44   ;;  %p1967_p9 = pnand %p1966_p6, %p1960_p11 }
 0xae7   : > { %1102 = vperm.xlu1 %1795, %v1064_v34  }
 0xaeb   : > { %1107 = vperm.xlu1 %1795, %v1065_v52  }
 0xaef   : > { %1797 = vset.pattern.permute.xlu1 %v2041_v56 }
 0xaf0   : > { %1238 = vperm.xlu1 %1797, %v2300_v41  }
 0xaf4   : > { %1798 = vset.pattern.permute.xlu1 %v2043_v49 }
 0xaf5   : > { %1254 = vperm.xlu1 %1798, %v2326_v51   ;;  %v1815_v51 = vld [vmem:[#allocation7] sm:$0xff]  }
 0xaf6   : > { %1675 = vmatprep.mubr.msk.bf16.mxu1 %vm544_vm0, %v1815_v51 }
 0xaf9   : > { %1800 = vset.pattern.permute.xlu1 %v2042_v58 }
 0xb45   : > { %v1075_v54 = vpop.permute.xlu0 %1074 }
 0xb46   : > { %v1086_v63 = vsub.f32 %v2282_v33, %v1075_v54  ;;  %v1818_v54 = vld [vmem:[%s2579_s8 + $0x8] sm:$0xff]  }
 0xb48   : > { %1116 = vperm.xlu1 %1800, %v1086_v63  }
 0xb49   : > { %v1079_v35 = vpop.permute.xlu1 %1078 }
 0xb4a   : > { %v1088_v4 = vsub.f32 %v2296_v39, %v1079_v35 }
 0xb4c   : > { %1126 = vperm.xlu0 %1799, %v1088_v4  }
 0xb4d   : > { %v1077_v5 = vpop.permute.xlu1 %1076 }
 0xb4e   : > { %v1087_v6 = vsub.f32 %v2290_v36, %v1077_v5 }
 0xb50   : > { %1121 = vperm.xlu0 %1799, %v1087_v6  }
 0xb51   : > { %v1081_v7 = vpop.permute.xlu1 %1080 }
 0xb52   : > { %v1089_v41 = vsub.f32 %v2309_v45, %v1081_v7 }
 0xb54   : > { %1801 = vset.pattern.permute.xlu0 %v2043_v49  ;;  %1131 = vperm.xlu1 %1800, %v1089_v41  }
 0xb55   : > { %1258 = vperm.xlu0 %1801, %v2330_v53  }
 0xb58   : > { %1802 = vset.pattern.permute.xlu1 %v2041_v56 }
 0xb59   : > { %1262 = vperm.xlu0 %1801, %v2334_v55   ;;  %1242 = vperm.xlu1 %1802, %v2304_v43   ;;  %v2044_v43 = vmov 7  }
 0xb5d   : > { %1246 = vperm.xlu1 %1802, %v2315_v47   ;;  %1804 = vset.pattern.permute.xlu0 %v2036_v48 }
 0xb5e   : > { %1284 = vperm.xlu0 %1804, %v2353_v60  }
 0xb61   : > { %1803 = vset.pattern.permute.xlu1 %v2043_v49 }
 0xb62   : > { %1266 = vperm.xlu1 %1803, %v2338_v57   ;;  %1296 = vperm.xlu0 %1804, %v2365_v62   ;;  %v1098_v47 = vpop.permute.xlu1 %1097  ;;  %v1093_v57 = vpop.permute.xlu0 %1092 }
 0xb63   : > { %v1110_v8 = vmul.f32 %v1093_v57, %v2439_v28 }
 0xb66   : > { %1805 = vset.pattern.permute.xlu1 %v2036_v48  ;;  %1807 = vset.pattern.permute.xlu0 %v2044_v43  ;;  %v1103_v53 = vpop.permute.xlu1 %1102  ;;  %v1235_v60 = vpop.permute.xlu0 %1234 }
 0xb67   : > { %1288 = vperm.xlu1 %1805, %v2348_v59   ;;  %1153 = vperm.xlu0 %1807, %v2290_v36   ;;  %v1249_v11 = vmul.f32 %v1869_v10, %v1235_v60 }
 0xb6a   : > { %v1108_v55 = vpop.permute.xlu1 %1107 }
 0xb6b   : > { %1292 = vperm.xlu1 %1805, %v2360_v61   ;;  %1808 = vset.pattern.permute.xlu0 %v2036_v48  ;;  %v1113_v12 = vmul.f32 %v1108_v55, %v2449_v37 }
 0xb6f   : > { %1806 = vset.pattern.permute.xlu1 %v2044_v43  ;;  %v1239_v59 = vpop.permute.xlu1 %1238 }
 0xb70   : > { %1149 = vperm.xlu1 %1806, %v2282_v33   ;;  %v1111_v33 = vmul.f32 %v1098_v47, %v2443_v3  ;;  %v1250_v17 = vmul.f32 %v1870_v16, %v1239_v59 }
 0xb74   : > { %1157 = vperm.xlu1 %1806, %v2296_v39   ;;  %v1255_v61 = vpop.permute.xlu1 %1254  ;;  %v1112_v39 = vmul.f32 %v1103_v53, %v2441_v1 }
 0xb75   : > { %v1269_v18 = vadd.f32 %v1255_v61, %v1249_v11 }
 0xb77   : > { %v1273_v1 = vmax.f32 %v1269_v18, 0.0 }
 0xb78   : > { %1161 = vperm.xlu1 %1806, %v2309_v45  }
 0xbc7   : > { %v1117_v62 = vpop.permute.xlu1 %1116 }
 0xbc8   : > { %v1134_v48 = vadd.f32 %v1117_v62, %v1110_v8 }
 0xbca   : > { %v1138_v13 = vmax.f32 %v1134_v48, 0.0 }
 0xbcb   : > { %v1127_v36 = vpop.permute.xlu0 %1126 }
 0xbcc   : > { %v1136_v14 = vadd.f32 %v1127_v36, %v1112_v39 }
 0xbce   : > { %v1140_v22 = vmax.f32 %v1136_v14, 0.0 }
 0xbcf   : > { %v1122_v9 = vpop.permute.xlu0 %1121 }
 0xbd0   : > { %v1135_v45 = vadd.f32 %v1122_v9, %v1111_v33 }
 0xbd2   : > { %v1139_v15 = vmax.f32 %v1135_v45, 0.0 }
 0xbd3   : > { %v1132_v19 = vpop.permute.xlu1 %1131 }
 0xbd4   : > { %v1146_v20 = vpack.c.bf16 %v1139_v15, %v1138_v13  ;;  %v1137_v28 = vadd.f32 %v1132_v19, %v1113_v12  ;;  %v1259_v3 = vpop.permute.xlu0 %1258 }
 0xbd5   : > { %v1270_v21 = vadd.f32 %v1259_v3, %v1250_v17 }
 0xbd6   : > { %v1141_v23 = vmax.f32 %v1137_v28, 0.0  ;;  %1671 = vmatprep.subr.bf16.mxu1 %v1146_v20 }
 0xbd7   : > { %v1274_v0 = vmax.f32 %v1270_v21, 0.0  ;;  %1672 = vmatpush3.bf16.msra.mxu1 %v1146_v20 }
 0xbd8   : > { %v1147_v2 = vpack.c.bf16 %v1141_v23, %v1140_v22  ;;  %v1243_v37 = vpop.permute.xlu1 %1242  ;;  %v1263_v40 = vpop.permute.xlu0 %1262 }
 0xbd9   : > { %v1281_v24 = vpack.c.bf16 %v1274_v0, %v1273_v1  ;;  %v1251_v38 = vmul.f32 %v1871_v32, %v1243_v37 }
 0xbda   : > { %1673 = vmatprep.subr.bf16.mxu1 %v1147_v2 }
 0xbdb   : > { %1674 = vmatpush3.bf16.msra.mxu1 %v1147_v2  ;;  %v1271_v44 = vadd.f32 %v1263_v40, %v1251_v38 }
 0xbdc   : > { %v1247_v34 = vpop.permute.xlu1 %1246  ;;  %1679 = vmatprep.subr.bf16.mxu1 %v1281_v24 }
 0xbdd   : > { %v1252_v50 = vmul.f32 %v1872_v46, %v1247_v34  ;;  %v1275_v42 = vmax.f32 %v1271_v44, 0.0  ;;  %v1285_v5 = vpop.permute.xlu0 %1284 }
 0xbde   : > { %1676 = vmatmul.mubr.msk.bf16.vlgmr.msra.gmra.mrb[4].mxu1 %vm544_vm0, %v1816_v30 }
 0xbdf   : > { %1680 = vmatpush3.bf16.msra.mxu1 %v1281_v24  ;;  %1683 = vmatprep.mubr.msk.bf16.mxu1 %vm544_vm0, %v1817_v31 }
 0xbe1   : > { %v1267_v52 = vpop.permute.xlu1 %1266  ;;  %v1297_v7 = vpop.permute.xlu0 %1296 }
 0xbe2   : > { %v1272_v56 = vadd.f32 %v1267_v52, %v1252_v50 }
 0xbe4   : > { %v1276_v58 = vmax.f32 %v1272_v56, 0.0 }
 0xbe6   : > { %v1282_v49 = vpack.c.bf16 %v1276_v58, %v1275_v42  ;;  %v1289_v63 = vpop.permute.xlu1 %1288  ;;  %v1154_v53 = vpop.permute.xlu0 %1153 }
 0xbe8   : > { %1681 = vmatprep.subr.bf16.mxu1 %v1282_v49 }
 0xbe9   : > { %1682 = vmatpush3.bf16.msra.mxu1 %v1282_v49 }
 0xbea   : > { %v1293_v35 = vpop.permute.xlu1 %1292 }
 0xbec   : > { %1684 = vmatmul.mubr.msk.bf16.vlgmr.msra.gmra.mrb[8].mxu1 %vm544_vm0, %v1818_v54 }
 0xbef   : > { %v1150_v4 = vpop.permute.xlu1 %1149 }
 0xbf3   : > { %v1158_v6 = vpop.permute.xlu1 %1157 }
 0xbf7   : > { %v1162_v51 = vpop.permute.xlu1 %1161 }
 0xcb1   : > { %v1677_v41 = vpop.f32.mrb[4].mxu1 }
 0xcb2   : > { %v1223_v43 = vadd.f32 %v1677_v41, %v1158_v6  ;;  %v1214_v47 = vpop.f32.mrb[5].mxu1 }
 0xcb3   : > { %v1215_v55 = vadd.f32 %v1214_v47, %v1150_v4  ;;  %v1678_v57 = vpop.f32.mrb[6].mxu1 }
 0xcb4   : > { %v2513_v59 = vadd.f32 %v2381_v25, %v1223_v43  ;;  %v1226_v60 = vadd.f32 %v1678_v57, %v1162_v51  ;;  %v1217_v61 = vpop.f32.mrb[7].mxu1 }
 0xcb5   : > { %v1229_v62 = vadd.f32 %v1215_v55, %v2383_v26  ;;  %v1218_v36 = vadd.f32 %v1217_v61, %v1154_v53 }
 0xcb6   : > { %v1232_v8 = vadd.f32 %v2385_v27, %v1226_v60 }
 0xcb7   : > { %v1230_v33 = vadd.f32 %v1218_v36, %v2389_v29 }
 0xcb8   : > { %v1400_v48 = vpack.c.bf16 %v1232_v8, %v2513_v59 }
 0xcb9   : > { %v1399_v9 = vpack.c.bf16 %v1230_v33, %v1229_v62 }
 0xcbb   : > { %1691 = vmatprep.mubr.msk.bf16.mxu0 %vm544_vm0, %v1399_v9 }
 0xcbf   : > { %v1685_v39 = vpop.f32.mrb[8].mxu1 }
 0xcc0   : > { %v1349_v45 = vpop.f32.mrb[9].mxu1  ;;  %v1358_v11 = vadd.f32 %v1685_v39, %v1293_v35 }
 0xcc1   : > { %v1686_v10 = vpop.f32.mrb[10].mxu1  ;;  %v1350_v13 = vadd.f32 %v1349_v45, %v1285_v5 }
 0xcc2   : > { %v1361_v25 = vadd.f32 %v1686_v10, %v1297_v7  ;;  %v1352_v12 = vpop.f32.mrb[11].mxu1 }
 0xcc3   : > { %v1353_v14 = vadd.f32 %v1352_v12, %v1289_v63 }
 0xcc4   : > { %v1365_v15 = vmax.f32 %v1358_v11, %v1361_v25 }
 0xcc5   : > { %v1364_v26 = vmax.f32 %v1350_v13, %v1353_v14 }
 0xcc7   : > { %v1366_v16 = vmax.f32 %v1364_v26, %v1365_v15 }
 0xcc9   : > { %v1367_v17 = vrot.slane %v1366_v16, 4 }
 0xccb   : > { %v1368_v27 = vmax.f32 %v1366_v16, %v1367_v17 }
 0xccd   : > { %v1369_v18 = vrot.slane %v1368_v27, 2 }
 0xccf   : > { %v1370_v29 = vmax.f32 %v1368_v27, %v1369_v18 }
 0xcd1   : > { %v1371_v19 = vrot.slane %v1370_v29, 1 }
 0xcd3   : > { %v1372_v20 = vmax.f32 %v1370_v29, %v1371_v19 }
 0xcd5   : > { %v1373_v28 = vsub.f32 %v1350_v13, %v1372_v20  ;;  %v1374_v3 = vsub.f32 %v1353_v14, %v1372_v20  ;;  %v1375_v21 = vsub.f32 %v1358_v11, %v1372_v20  ;;  %v1376_v22 = vsub.f32 %v1361_v25, %v1372_v20 }
 0xcd7   : > { %v1377_v23 = vmul.f32 1.442695, %v1373_v28  ;;  %v1379_v1 = vmul.f32 1.442695, %v1374_v3  ;;  %v1381_v0 = vmul.f32 1.442695, %v1375_v21 }
 0xcd8   : > { %v1383_v2 = vmul.f32 1.442695, %v1376_v22 }
 0xcd9   : > { %1859 = vpow2.f32 %v1377_v23 }
 0xcda   : > { %1861 = vpow2.f32 %v1379_v1 }
 0xcdb   : > { %1863 = vpow2.f32 %v1381_v0 }
 0xcdc   : > { %1865 = vpow2.f32 %v1383_v2 }
 0xce3   : > { %v1860_v37 = vpop.eup %1859 }
 0xce4   : > { %v1862_v24 = vpop.eup %1861 }
 0xce5   : > { %v1385_v30 = vadd.f32 %v1862_v24, %v1860_v37  ;;  %v1864_v31 = vpop.eup %1863 }
 0xce6   : > { %v1866_v38 = vpop.eup %1865 }
 0xce7   : > { %v1386_v32 = vadd.f32 %v1864_v31, %v1385_v30 }
 0xce9   : > { %v1387_v34 = vadd.f32 %v1866_v38, %v1386_v32 }
 0xceb   : > { %v1388_v40 = vrot.slane %v1387_v34, 4 }
 0xced   : > { %v1389_v44 = vadd.f32 %v1388_v40, %v1387_v34 }
 0xcef   : > { %v1390_v46 = vrot.slane %v1389_v44, 2 }
 0xcf1   : > { %v1391_v50 = vadd.f32 %v1390_v46, %v1389_v44 }
 0xcf3   : > { %v1392_v52 = vrot.slane %v1391_v50, 1 }
 0xcf5   : > { %v1393_v56 = vadd.f32 %v1392_v52, %v1391_v50 }
 0xcf7   : > { %1867 = vrcp.f32 %v1393_v56 }
 0xd01   : > { %v1868_v42 = vpop.eup %1867 }
 0xd02   : > { %v1395_v58 = vmul.f32 %v1868_v42, %v1860_v37  ;;  %v1396_v49 = vmul.f32 %v1868_v42, %v1862_v24  ;;  %v1397_v54 = vmul.f32 %v1868_v42, %v1864_v31  ;;  %v1398_v63 = vmul.f32 %v1868_v42, %v1866_v38 }
 0xd04   : > { %v1401_v35 = vpack.c.bf16 %v1396_v49, %v1395_v58  ;;  %v1402_v4 = vpack.c.bf16 %v1398_v63, %v1397_v54 }
 0xd06   : > { %1687 = vmatprep.subr.bf16.mxu0 %v1401_v35 }
 0xd07   : > { %1688 = vmatpush3.bf16.msra.mxu0 %v1401_v35 }
 0xd08   : > { %1689 = vmatprep.subr.bf16.mxu0 %v1402_v4 }
 0xd0b   : > { %1690 = vmatpush3.bf16.msra.mxu0 %v1402_v4 }
 0xd0e   : > { %1692 = vmatmul.mubr.msk.bf16.vlgmr.msra.gmra.mrb[12].mxu0 %vm544_vm0, %v1400_v48 }
 0xde1   : > { %v1693_v5 = vpop.f32.mrb[12].mxu0 }
 0xde2   : > { %1460 = vst [vmem:[%s367_s28 + $0x10] sm:$0xff] %v1693_v5  ;;  %v1443_v6 = vpop.f32.mrb[13].mxu0 }
 0xde3   : > { %1458 = vst [vmem:[%s367_s28] sm:$0xff] %v1443_v6  ;;  %v1694_v7 = vpop.f32.mrb[14].mxu0 }
 0xde4   : > { %1461 = vst [vmem:[%s367_s28 + $0x18] sm:$0xff] %v1694_v7  ;;  %v1446_v41 = vpop.f32.mrb[15].mxu0 }
 0xde5   : > { %1459 = vst [vmem:[%s367_s28 + $0x8] sm:$0xff] %v1446_v41 }
 0xde6   : > { %1970 = shalt.err (!%p1967_p9)
}
 0xde7   : > { %s1971_s23 = scalar_lea.hbm %s2528_s20, 512  ;;  %s1975_s30 = scalar_lea.hbm %s2580_s9, 1024 }
 0xde8   : > { %p1972_p2 = scmp.ne.s32.totalorder %s2528_s20, %s1971_s23  ;;  %p1976_p5 = scmp.lt.u32.totalorder %s2528_s20, %s2580_s9 }
 0xde9   : > { %p1977_p10 = scmp.lt.u32.totalorder %s1975_s30, %s1971_s23  ;;  %p1979_p12 = scmp.lt.u32.totalorder %s1971_s23, %s2528_s20 }
 0xdea   : > { %p1973_p0 = pnand %p1972_p2, %p2604_p7 }
 0xdeb   : > { %p1978_p4 = por %p1977_p10, %p1976_p5 }
 0xdec   : > { %p1974_p3 = pneg %p1973_p0 }
 0xded   : > { %p1980_p8 = por %p1979_p12, %p1978_p4 }
 0xdef   : > { %p1981_p11 = pnand %p1980_p8, %p1974_p3 }
 0xdf1   : > { %1984 = shalt.err (!%p1981_p11)
}
 0xdf2   : > { %s2046_s24 = smov 128   ;;  %s2047_s28 = smov 8  }
 0xdf3   : > { %1709 = dma.vmem_to_hbm [thread:$0]  (%p2604_p7), %s2523_s21, 512, %s2528_s20, %s2530_s17, %s2046_s24, %s2046_s24, %s2047_s28  }
 0xdf4 PF: > { %s2605_s16 = sld [smem:[#allocation12_spill]]  ;;  %s2606_s11 = sld [smem:[#allocation16_spill]] }
 0xdf5   : > { %p1731_p13 = scmp.ge.s32.totalorder %s2027_s12, 2 }
 0xdfa   : > { %s1491_s15 = sand.u32 1, %s2605_s16   ;;  %p2607_p1 = scmp.ne.s32.totalorder %s2606_s11, 0 }
 0xdfb   : > { %s1492_s13 = scalar_lea.sflag [#allocation4], %s1491_s15 }
 0xdfc   : > { %p1722_p6 = pnand %p1731_p13, %p2607_p1 }
 0xdfe   : > { %2010 = dma.done.wait (!%p1722_p6), %s1492_s13, 512  }
 0xdff   : > { %2012 = vsyncadd (!%p1722_p6), %s1492_s13, 4294966784  ;;  %s2608_s12 = sld [smem:[#allocation14_spill]]  ;;  %s2609_s22 = sld [smem:[#allocation13_spill]] }
 0xe00   : > { %s2610_s11 = sld [smem:[#allocation15_spill]]  ;;  %s2611_s30 = smov %s2019_s10 }
 0xe05   : > { %p21_p9 = scmp.ge.s32.totalorder %s2608_s12, 4   ;;  %s2612_s10 = smov %s2609_s22 }
 0xe07   :  { %23 = sbr.rel (!%p21_p9) target bundleno = 5 (0x5), region = 104 }
 0xe0e   :  { %1497 = vsyncpa [#allocation3], 1 }
 0xe0f   :  { %1499 = vsyncpa [#allocation3 + $0x1], 1 }
 0xe10   :  { %1500 = vsyncpa [#allocation6], 1 }
 0xe11   :  { %1501 = vsyncpa [#allocation4], 1 }
 0xe12   :  { %1503 = vsyncpa [#allocation4 + $0x1], 1 }

</bundles_post_ra>
